<compile_context>
chip_gen: v6e
topology: v6e:2x2x1
jax: 0.10.0
libtpu: 0.0.40
codegen_flags: <defaults>
</compile_context>

<pallas_src>
import jax
import jax.numpy as jnp
from jax.experimental import pallas as pl
from jax.experimental.pallas import tpu as pltpu


def _round_up(x, m):
    return (x + m - 1) // m * m


def _autoencoder_kernel(x_ref, we_ref, be_ref, wd_ref, bd_ref, recon_ref):
    # x_ref:  [TM, D]   (original x dtype)   we_ref: [D, HID_P]   (compute dtype)
    # be_ref: [1, HID_P] (f32)               wd_ref: [HID_P, TN]  (compute dtype)
    # bd_ref: [1, TN]    (f32)               recon_ref: [TM, TN]  (out dtype)
    cdt = we_ref.dtype
    # In-kernel cast: the wrapper streams x untouched; cast is VPU work hidden
    # under the MXU, saving a full HBM round trip of the activations.
    x = x_ref[...].astype(cdt)
    # Encoder matmul on the MXU with f32 accumulation; bias + ReLU in f32 (VPU).
    z = jnp.dot(x, we_ref[...], preferred_element_type=jnp.float32) + be_ref[...]
    z = jnp.maximum(z, 0.0)
    # Decoder matmul (one output-column tile), f32 accumulation + f32 bias add.
    recon = (
        jnp.dot(z.astype(cdt), wd_ref[...], preferred_element_type=jnp.float32)
        + bd_ref[...]
    )
    recon_ref[...] = recon.astype(recon_ref.dtype)


def prepare_params(w_enc, b_enc, w_dec, b_dec, *, compute_dtype=jnp.bfloat16):
    """One-time (model-load) parameter prep.

    Pads the hidden dim to a full 128-lane / MXU-native width (exact: padded
    columns are 0 after ReLU and contribute 0 to the decoder dot) and casts the
    matmul operands to the compute dtype.  Hoisted out of the per-call forward
    so this HBM traffic is not paid on every inference call.
    """
    D, HID = w_enc.shape
    HID_P = max(128, _round_up(HID, 128))
    w_enc_p = jnp.zeros((D, HID_P), jnp.float32).at[:, :HID].set(
        w_enc.astype(jnp.float32)).astype(compute_dtype)
    b_enc_p = jnp.zeros((1, HID_P), jnp.float32).at[:, :HID].set(
        b_enc.reshape(1, HID).astype(jnp.float32))
    w_dec_p = jnp.zeros((HID_P, D), jnp.float32).at[:HID, :].set(
        w_dec.astype(jnp.float32)).astype(compute_dtype)
    b_dec_p = b_dec.reshape(1, D).astype(jnp.float32)
    # TODO(synk): on v7x, weights could additionally be stored as fp8 (e4m3)
    # with bf16 activations to halve weight DMA again if accuracy tolerates it.
    return {"w_enc": w_enc_p, "b_enc": b_enc_p, "w_dec": w_dec_p, "b_dec": b_dec_p}


def inference_model_wrapper_forward(x_nchw, params, *, out_dtype=None):
    """Pallas equivalent of InferenceModelWrapper.forward: returns recon only."""
    B, C, H, W = x_nchw.shape
    D = C * H * W
    w_enc_p, b_enc_p = params["w_enc"], params["b_enc"]
    w_dec_p, b_dec_p = params["w_dec"], params["b_dec"]
    HID_P = w_enc_p.shape[1]
    assert w_enc_p.shape[0] == D and w_dec_p.shape == (HID_P, D)
    if out_dtype is None:
        out_dtype = x_nchw.dtype

    x_itemsize = jnp.dtype(x_nchw.dtype).itemsize
    out_itemsize = jnp.dtype(out_dtype).itemsize
    c_itemsize = jnp.dtype(w_enc_p.dtype).itemsize

    # Sublane packing of the streamed tiles: f32 -> 8 rows, bf16 -> 16, fp8 -> 32.
    row_align = max(8, 8 * (4 // x_itemsize), 8 * (4 // out_itemsize))

    # Batch tile: as large as useful (per-grid-step overhead ~0.35us), capped at
    # 512 rows to bound the double-buffered x/recon VMEM footprint.
    TM = min(512, _round_up(B, row_align))
    B_P = _round_up(B, TM)
    n_batch = B_P // TM

    # v7x megacore: guarantee >=2 parallel grid steps.  If the batch grid has a
    # single step, split the decoder output columns in two (the tiny encoder is
    # recomputed per column tile; the kernel is memory-bound so this is free).
    n_n = 2 if (n_batch == 1 and D % 256 == 0) else 1
    TN = D // n_n

    # Row-major flatten == torch x.view(B, -1).  Pad the batch with zero rows;
    # padded rows produce relu(b_enc) @ W_dec + b_dec garbage that is sliced off
    # below and never read.  NOTE: no dtype cast here (kernel casts in VMEM).
    x_flat = x_nchw.reshape(B, D)
    if B_P != B:
        x_flat = jnp.pad(x_flat, ((0, B_P - B), (0, 0)))

    grid = (n_batch, n_n)

    # Rough VMEM budget (resident weights + double-buffered x/recon tiles +
    # in-kernel temporaries) -- made explicit so the 64 MiB v7x part is safe.
    vmem_est = (
        2 * D * HID_P * c_itemsize * (1 if n_n == 1 else 2)   # W_enc + W_dec
        + (HID_P + D) * 4 * 2                                 # biases
        + 2 * TM * D * x_itemsize                             # x (double buffered)
        + 2 * TM * TN * out_itemsize                          # recon (double buffered)
        + TM * HID_P * 4 + TM * TN * 4                        # z / acc temporaries
    )
    vmem_limit = int(min(48 * 2**20, max(8 * 2**20, 2 * vmem_est)))
    # TODO(synk): if D grows past ~4-8K, stop keeping both weights VMEM-resident:
    # add a reduction grid axis over D for the encoder and tile W_dec over N.

    cost = pl.CostEstimate(
        flops=2 * B_P * D * HID_P * (n_n + 1),
        transcendentals=0,
        bytes_accessed=(
            B_P * D * x_itemsize
            + 2 * D * HID_P * c_itemsize
            + (HID_P + D) * 4
            + B_P * D * out_itemsize
        ),
    )

    def _spec(shape, imap, mode):
        if mode is None:
            return pl.BlockSpec(shape, imap)
        return pl.BlockSpec(shape, imap, pipeline_mode=mode)

    def _run(single_buffer_resident):
        # Constant-index-map operands never change block -> single-buffering
        # them halves their VMEM footprint (no pipelining benefit to lose).
        resident = pl.Buffered(1) if single_buffer_resident else None
        dec_mode = pl.Buffered(1) if (single_buffer_resident and n_n == 1) else None
        in_specs = [
            pl.BlockSpec((TM, D), lambda i, j: (i, 0)),           # x: batch-tiled
            _spec((D, HID_P), lambda i, j: (0, 0), resident),     # W_enc resident
            _spec((1, HID_P), lambda i, j: (0, 0), resident),     # b_enc resident
            _spec((HID_P, TN), lambda i, j: (0, j), dec_mode),    # W_dec (N-tiled)
            _spec((1, TN), lambda i, j: (0, j), dec_mode),        # b_dec (N-tiled)
        ]
        return pl.pallas_call(
            _autoencoder_kernel,
            out_shape=jax.ShapeDtypeStruct((B_P, D), out_dtype),
            grid_spec=pltpu.PrefetchScalarGridSpec(
                num_scalar_prefetch=0,
                grid=grid,
                in_specs=in_specs,
                out_specs=pl.BlockSpec((TM, TN), lambda i, j: (i, j)),
            ),
            compiler_params=pltpu.CompilerParams(
                # Batch and output-column tiles are independent -> megacore.
                dimension_semantics=("parallel", "parallel"),
                vmem_limit_bytes=vmem_limit,
            ),
            cost_estimate=cost,
        )(x_flat, w_enc_p, b_enc_p, w_dec_p, b_dec_p)

    try:
        recon_flat = _run(single_buffer_resident=True)
    except Exception:
        # pl.Buffered(1) (single-buffered resident weights) not accepted by this
        # jax/libtpu version -- fall back to default double buffering.
        recon_flat = _run(single_buffer_resident=False)

    return recon_flat[:B].reshape(B, C, H, W)


def _reference(x_nchw, w_enc, b_enc, w_dec, b_dec, dtype=jnp.float32):
    """Pure-JAX reference with matching operand dtype (f32 accumulation)."""
    B = x_nchw.shape[0]
    x = x_nchw.reshape(B, -1).astype(dtype)
    z = jnp.maximum(
        jnp.dot(x, w_enc.astype(dtype), preferred_element_type=jnp.float32)
        + b_enc.reshape(1, -1).astype(jnp.float32),
        0.0,
    )
    recon = (
        jnp.dot(z.astype(dtype), w_dec.astype(dtype),
                preferred_element_type=jnp.float32)
        + b_dec.reshape(1, -1).astype(jnp.float32)
    )
    return recon.reshape(x_nchw.shape).astype(x_nchw.dtype)


if __name__ == "__main__":
    key = jax.random.PRNGKey(0)
    kx, k1, k2, k3, k4 = jax.random.split(key, 5)

    B, C, H, W = 2, 4, 16, 16      # input NCHW
    D = C * H * W                  # 1024 (lane-aligned)
    HID = 32                       # latent size (padded to 128 at prepare time)

    x = jax.random.normal(kx, (B, C, H, W), dtype=jnp.float32)

    # Deterministic synthetic parameters (no checkpoint load).
    w_enc = jax.random.normal(k1, (D, HID), dtype=jnp.float32) * 0.02
    b_enc = jax.random.normal(k2, (1, HID), dtype=jnp.float32) * 0.02
    w_dec = jax.random.normal(k3, (HID, D), dtype=jnp.float32) * 0.02
    b_dec = jax.random.normal(k4, (1, D), dtype=jnp.float32) * 0.02

    # Default (bf16 operands, f32 accumulation): MXU-native on v5e/v6e/v7x.
    params_bf16 = prepare_params(w_enc, b_enc, w_dec, b_dec)        # cached once
    recon = jax.block_until_ready(inference_model_wrapper_forward(x, params_bf16))
    assert recon.shape == x.shape, (recon.shape, x.shape)
    ref_bf16 = _reference(x, w_enc, b_enc, w_dec, b_dec, dtype=jnp.bfloat16)
    assert jnp.allclose(recon, ref_bf16, atol=2e-2, rtol=2e-2), "bf16 mismatch"

    # f32-operand path (matches the PyTorch module's parameter dtype; note the
    # TPU MXU uses default-precision f32 matmul, same as the jnp reference).
    params_f32 = prepare_params(w_enc, b_enc, w_dec, b_dec,
                                compute_dtype=jnp.float32)
    recon_f32 = jax.block_until_ready(
        inference_model_wrapper_forward(x, params_f32))
    ref_f32 = _reference(x, w_enc, b_enc, w_dec, b_dec, dtype=jnp.float32)
    assert jnp.allclose(recon_f32, ref_f32, atol=1e-4, rtol=1e-4), "f32 mismatch"

    print("KERNEL_OK")
</pallas_src>

<mosaic_0001>
module attributes {stable_mosaic.version = 11 : i64} {
  func.func @_autoencoder_kernel(%arg0: i32, %arg1: i32, %arg2: memref<8x1024xf32, #tpu.memory_space<vmem>>, %arg3: memref<1024x128xbf16, #tpu.memory_space<vmem>>, %arg4: memref<1x128xf32, #tpu.memory_space<vmem>>, %arg5: memref<128x512xbf16, #tpu.memory_space<vmem>>, %arg6: memref<1x512xf32, #tpu.memory_space<vmem>>, %arg7: memref<8x512xf32, #tpu.memory_space<vmem>>) attributes {dimension_semantics = [#tpu.dimension_semantics<parallel>, #tpu.dimension_semantics<parallel>], iteration_bounds = array<i64: 1, 2>, scalar_prefetch = 0 : i64, scratch_operands = 0 : i64, tpu.core_type = #tpu.core_type<tc>, window_params = [{transform_indices = @transform_0, window_bounds = array<i64: 8, 1024>}, {pipeline_mode = #tpu.pipeline_mode<synchronous>, transform_indices = @transform_1, window_bounds = array<i64: 1024, 128>}, {pipeline_mode = #tpu.pipeline_mode<synchronous>, transform_indices = @transform_2, window_bounds = array<i64: 1, 128>}, {transform_indices = @transform_3, window_bounds = array<i64: 128, 512>}, {transform_indices = @transform_4, window_bounds = array<i64: 1, 512>}, {transform_indices = @transform_5, window_bounds = array<i64: 8, 512>}]} {
    %c0 = arith.constant 0 : index
    %c0_0 = arith.constant 0 : index
    %0 = vector.load %arg2[%c0, %c0_0] : memref<8x1024xf32, #tpu.memory_space<vmem>>, vector<8x1024xf32>
    %1 = arith.truncf %0 : vector<8x1024xf32> to vector<8x1024xbf16>
    %c0_1 = arith.constant 0 : index
    %c0_2 = arith.constant 0 : index
    %2 = vector.load %arg3[%c0_1, %c0_2] : memref<1024x128xbf16, #tpu.memory_space<vmem>>, vector<1024x128xbf16>
    %cst = arith.constant dense<0.000000e+00> : vector<8x128xf32>
    %3 = tpu.matmul %1, %2, %cst {dimension_numbers = #tpu.dot_dimension_numbers<[1], [0], [0], [1], [0, 0, 1, 1], [], []>} : vector<8x1024xbf16>, vector<1024x128xbf16>, vector<8x128xf32> -> vector<8x128xf32>
    %c0_3 = arith.constant 0 : index
    %c0_4 = arith.constant 0 : index
    %4 = vector.load %arg4[%c0_3, %c0_4] : memref<1x128xf32, #tpu.memory_space<vmem>>, vector<1x128xf32>
    %5 = vector.broadcast %4 : vector<1x128xf32> to vector<8x128xf32>
    %6 = arith.addf %3, %5 : vector<8x128xf32>
    %cst_5 = arith.constant 0.000000e+00 : f32
    %7 = vector.broadcast %cst_5 : f32 to vector<8x128xf32>
    %8 = arith.maximumf %6, %7 : vector<8x128xf32>
    %9 = arith.truncf %8 : vector<8x128xf32> to vector<8x128xbf16>
    %c0_6 = arith.constant 0 : index
    %c0_7 = arith.constant 0 : index
    %10 = vector.load %arg5[%c0_6, %c0_7] : memref<128x512xbf16, #tpu.memory_space<vmem>>, vector<128x512xbf16>
    %cst_8 = arith.constant dense<0.000000e+00> : vector<8x512xf32>
    %11 = tpu.matmul %9, %10, %cst_8 {dimension_numbers = #tpu.dot_dimension_numbers<[1], [0], [0], [1], [0, 0, 1, 1], [], []>} : vector<8x128xbf16>, vector<128x512xbf16>, vector<8x512xf32> -> vector<8x512xf32>
    %c0_9 = arith.constant 0 : index
    %c0_10 = arith.constant 0 : index
    %12 = vector.load %arg6[%c0_9, %c0_10] : memref<1x512xf32, #tpu.memory_space<vmem>>, vector<1x512xf32>
    %13 = vector.broadcast %12 : vector<1x512xf32> to vector<8x512xf32>
    %14 = arith.addf %11, %13 : vector<8x512xf32>
    %c0_11 = arith.constant 0 : index
    %c0_12 = arith.constant 0 : index
    %15 = vector.load %arg7[%c0_11, %c0_12] : memref<8x512xf32, #tpu.memory_space<vmem>>, vector<8x512xf32>
    tpu.vector_store %arg7[%c0_11, %c0_12], %14 {strides = array<i32>} : memref<8x512xf32, #tpu.memory_space<vmem>>, vector<8x512xf32>,
    return
  }
  func.func @transform_0(%arg0: i32, %arg1: i32) -> (i32, i32) {
    %c0_i32 = arith.constant 0 : i32
    %c0_i32_0 = arith.constant 0 : i32
    return %arg0, %c0_i32 : i32, i32
  }
  func.func @transform_1(%arg0: i32, %arg1: i32) -> (i32, i32) {
    %c0_i32 = arith.constant 0 : i32
    %c0_i32_0 = arith.constant 0 : i32
    %c0_i32_1 = arith.constant 0 : i32
    return %c0_i32, %c0_i32_0 : i32, i32
  }
  func.func @transform_2(%arg0: i32, %arg1: i32) -> (i32, i32) {
    %c0_i32 = arith.constant 0 : i32
    %c0_i32_0 = arith.constant 0 : i32
    %c0_i32_1 = arith.constant 0 : i32
    return %c0_i32, %c0_i32_0 : i32, i32
  }
  func.func @transform_3(%arg0: i32, %arg1: i32) -> (i32, i32) {
    %c0_i32 = arith.constant 0 : i32
    %c0_i32_0 = arith.constant 0 : i32
    return %c0_i32, %arg1 : i32, i32
  }
  func.func @transform_4(%arg0: i32, %arg1: i32) -> (i32, i32) {
    %c0_i32 = arith.constant 0 : i32
    %c0_i32_0 = arith.constant 0 : i32
    return %c0_i32, %arg1 : i32, i32
  }
  func.func @transform_5(%arg0: i32, %arg1: i32) -> (i32, i32) {
    %c0_i32 = arith.constant 0 : i32
    return %arg0, %arg1 : i32, i32
  }
}

module attributes {stable_mosaic.version = 11 : i64} {
  func.func @_autoencoder_kernel(%arg0: i32, %arg1: i32, %arg2: memref<8x1024xf32, #tpu.memory_space<vmem>>, %arg3: memref<1024x128xbf16, #tpu.memory_space<vmem>>, %arg4: memref<1x128xf32, #tpu.memory_space<vmem>>, %arg5: memref<128x512xbf16, #tpu.memory_space<vmem>>, %arg6: memref<1x512xf32, #tpu.memory_space<vmem>>, %arg7: memref<8x512xf32, #tpu.memory_space<vmem>>) attributes {dimension_semantics = [#tpu.dimension_semantics<parallel>, #tpu.dimension_semantics<parallel>], iteration_bounds = array<i64: 1, 2>, scalar_prefetch = 0 : i64, scratch_operands = 0 : i64, tpu.core_type = #tpu.core_type<tc>, window_params = [{transform_indices = @transform_0, window_bounds = array<i64: 8, 1024>}, {pipeline_mode = #tpu.pipeline_mode<synchronous>, transform_indices = @transform_1, window_bounds = array<i64: 1024, 128>}, {pipeline_mode = #tpu.pipeline_mode<synchronous>, transform_indices = @transform_2, window_bounds = array<i64: 1, 128>}, {transform_indices = @transform_3, window_bounds = array<i64: 128, 512>}, {transform_indices = @transform_4, window_bounds = array<i64: 1, 512>}, {transform_indices = @transform_5, window_bounds = array<i64: 8, 512>}]} {
    %c0 = arith.constant 0 : index
    %c0_0 = arith.constant 0 : index
    %0 = vector.load %arg2[%c0, %c0_0] : memref<8x1024xf32, #tpu.memory_space<vmem>>, vector<8x1024xf32>
    %1 = arith.truncf %0 : vector<8x1024xf32> to vector<8x1024xbf16>
    %c0_1 = arith.constant 0 : index
    %c0_2 = arith.constant 0 : index
    %2 = vector.load %arg3[%c0_1, %c0_2] : memref<1024x128xbf16, #tpu.memory_space<vmem>>, vector<1024x128xbf16>
    %cst = arith.constant dense<0.000000e+00> : vector<8x128xf32>
    %3 = tpu.matmul %1, %2, %cst {dimension_numbers = #tpu.dot_dimension_numbers<[1], [0], [0], [1], [0, 0, 1, 1], [], []>} : vector<8x1024xbf16>, vector<1024x128xbf16>, vector<8x128xf32> -> vector<8x128xf32>
    %c0_3 = arith.constant 0 : index
    %c0_4 = arith.constant 0 : index
    %4 = vector.load %arg4[%c0_3, %c0_4] : memref<1x128xf32, #tpu.memory_space<vmem>>, vector<1x128xf32>
    %5 = vector.broadcast %4 : vector<1x128xf32> to vector<8x128xf32>
    %6 = arith.addf %3, %5 : vector<8x128xf32>
    %cst_5 = arith.constant 0.000000e+00 : f32
    %7 = vector.broadcast %cst_5 : f32 to vector<8x128xf32>
    %8 = arith.maximumf %6, %7 : vector<8x128xf32>
    %9 = arith.truncf %8 : vector<8x128xf32> to vector<8x128xbf16>
    %c0_6 = arith.constant 0 : index
    %c0_7 = arith.constant 0 : index
    %10 = vector.load %arg5[%c0_6, %c0_7] : memref<128x512xbf16, #tpu.memory_space<vmem>>, vector<128x512xbf16>
    %cst_8 = arith.constant dense<0.000000e+00> : vector<8x512xf32>
    %11 = tpu.matmul %9, %10, %cst_8 {dimension_numbers = #tpu.dot_dimension_numbers<[1], [0], [0], [1], [0, 0, 1, 1], [], []>} : vector<8x128xbf16>, vector<128x512xbf16>, vector<8x512xf32> -> vector<8x512xf32>
    %c0_9 = arith.constant 0 : index
    %c0_10 = arith.constant 0 : index
    %12 = vector.load %arg6[%c0_9, %c0_10] : memref<1x512xf32, #tpu.memory_space<vmem>>, vector<1x512xf32>
    %13 = vector.broadcast %12 : vector<1x512xf32> to vector<8x512xf32>
    %14 = arith.addf %11, %13 : vector<8x512xf32>
    %c0_11 = arith.constant 0 : index
    %c0_12 = arith.constant 0 : index
    %15 = vector.load %arg7[%c0_11, %c0_12] : memref<8x512xf32, #tpu.memory_space<vmem>>, vector<8x512xf32>
    tpu.vector_store %arg7[%c0_11, %c0_12], %14 {strides = array<i32>} : memref<8x512xf32, #tpu.memory_space<vmem>>, vector<8x512xf32>,
    return
  }
  func.func @transform_0(%arg0: i32, %arg1: i32) -> (i32, i32) {
    %c0_i32 = arith.constant 0 : i32
    %c0_i32_0 = arith.constant 0 : i32
    return %arg0, %c0_i32 : i32, i32
  }
  func.func @transform_1(%arg0: i32, %arg1: i32) -> (i32, i32) {
    %c0_i32 = arith.constant 0 : i32
    %c0_i32_0 = arith.constant 0 : i32
    %c0_i32_1 = arith.constant 0 : i32
    return %c0_i32, %c0_i32_0 : i32, i32
  }
  func.func @transform_2(%arg0: i32, %arg1: i32) -> (i32, i32) {
    %c0_i32 = arith.constant 0 : i32
    %c0_i32_0 = arith.constant 0 : i32
    %c0_i32_1 = arith.constant 0 : i32
    return %c0_i32, %c0_i32_0 : i32, i32
  }
  func.func @transform_3(%arg0: i32, %arg1: i32) -> (i32, i32) {
    %c0_i32 = arith.constant 0 : i32
    %c0_i32_0 = arith.constant 0 : i32
    return %c0_i32, %arg1 : i32, i32
  }
  func.func @transform_4(%arg0: i32, %arg1: i32) -> (i32, i32) {
    %c0_i32 = arith.constant 0 : i32
    %c0_i32_0 = arith.constant 0 : i32
    return %c0_i32, %arg1 : i32, i32
  }
  func.func @transform_5(%arg0: i32, %arg1: i32) -> (i32, i32) {
    %c0_i32 = arith.constant 0 : i32
    return %arg0, %arg1 : i32, i32
  }
}

</mosaic_0001>

<bundles_post_ra>
// kernel: tpu_custom_call.1
= control target key start
LH: loop header
LB: loop body
LE: loop exit
PB: predicated region body
PF: predicated region fallthrough
CT: control target
= control target key end

     0   :  { %s2371_s0 = inlined_call_operand.hbm [shape: f32[8,1024], index: 0, kind: input, shape index: {}]   ;;  %s2372_s1 = inlined_call_operand.hbm [shape: bf16[1024,128], index: 1, kind: input, shape index: {}]   ;;  %s2373_s2 = inlined_call_operand.vmem [shape: f32[1,128], index: 2, kind: input, shape index: {}]   ;;  %s2374_s3 = inlined_call_operand.hbm [shape: bf16[128,1024], index: 3, kind: input, shape index: {}]   ;;  %s2375_s4 = inlined_call_operand.hbm [shape: f32[1,1024], index: 4, kind: input, shape index: {}]   ;;  %s2376_s5 = inlined_call_operand.hbm [shape: f32[8,1024], index: 5, kind: output, shape index: {}]  }
   0x1   :  { %2384 = sst [smem:[#allocation18_spill]] %s2371_s0 }
   0x2   :  { %2385 = sst [smem:[#allocation19_spill]] %s2374_s3 }
   0x3   :  { %10 = vsyncpa [#allocation3], 0 }
   0x4   :  { %11 = vsyncpa [#allocation6], 0 }
   0x5   :  { %12 = vsyncpa [#allocation4], 0 }
   0x6   :  { %14 = vsyncpa [#allocation4 + $0x1], 0  ;;  %s2121_s18 = smov 0   ;;  %s2123_s19 = smov 0  }
   0x7   :  { %s2125_s20 = smov 0   ;;  %s2127_s21 = smov 0  }
   0x8   :  { %s2129_s22 = smov 0   ;;  %s2131_s23 = smov 0  }
   0x9 LB: > { %2386 = sst [smem:[#allocation14_spill]] %s2078_s23  ;;  %s2152_s24 = sadd.s32 4294967295, %s2078_s23   ;;  %s2078_s23 = sphi %s2131_s23, %s20_s23   ;;  %s2074_s22 = sphi %s2129_s22, %s2415_s22   ;;  %s2070_s21 = sphi %s2127_s21, %s2414_s21   ;;  %s2066_s20 = sphi %s2125_s20, %s2413_s20   ;;  %s2062_s19 = sphi %s2123_s19, %s2412_s19   ;;  %s2058_s18 = sphi %s2121_s18, %s2411_s18  }
   0xa   : > { %s1466_s25 = sadd.s32 4294967294, %s2078_s23   ;;  %s107_s26 = sadd.s32 1, %s2066_s20 }
   0xb   : > { %p114_p0 = scmp.ne.s32.totalorder %s2066_s20, %s2062_s19  ;;  %p115_p1 = scmp.eq.s32.totalorder %s2078_s23, 0 }
   0xc   : > { %p120_p2 = scmp.ne.s32.totalorder %s2062_s19, %s2058_s18  ;;  %p2382_p3 = scmp.eq.s32.totalorder %s2152_s24, 0 }
   0xd   : > { %p172_p4 = scmp.eq.s32.totalorder %s2152_s24, 1  ;;  %p2163_p5 = por %p115_p1, %p114_p0 }
   0xe   : > { %p178_p6 = scmp.eq.s32.totalorder %s1466_s25, 1  ;;  %p2169_p7 = por %p2382_p3, %p120_p2 }
   0xf   : > { %p2173_p8 = por %p172_p4, %p114_p0  ;;  %p1467_p10 = scmp.ge.s32.totalorder %s2078_s23, 1 }
  0x10   : > { %p2177_p9 = por %p178_p6, %p120_p2  ;;  %p185_p11 = scmp.lt.s32.totalorder %s2078_s23, 3 }
  0x11   : > { %s2389_s29 = scalar_select %p2173_p8, 1, 0 }
  0x12   : > { %s2390_s30 = scalar_select %p2177_p9, 1, 0 }
  0x13   : > { %p2184_p13 = pnand %p1467_p10, %p185_p11  ;;  %s2080_s7 = smov [#allocation2]  }
  0x14   : > { %2391 = sst [smem:[#allocation15_spill]] %s2390_s30  ;;  %s201_s8 = sshll.u32 %s2080_s7, 4  ;;  %s202_s8 = int_to_ptr.vmem [resolvable:$true] %s201_s8 }
  0x15   : > { %p1710_p1 = scmp.lt.s32.totalorder %s2078_s23, 2  ;;  %p1690_p0 = pneg %p2184_p13 }
  0x16   : > { %s29_s11 = sadd.s32 1, %s2074_s22  ;;  %s228_s12 = sand.u32 1, %s2078_s23  }
  0x17   : > { %p2193_p4 = pnand %p1710_p1, %p2163_p5  ;;  %p2199_p2 = pnand %p1690_p0, %p2382_p3 }
  0x18   : > { %p30_p6 = scmp.ge.s32.totalorder %s29_s11, 2  ;;  %s1893_s13 = scalar_lea.vmem %s202_s8, 1024 }
  0x19   : > { %p1884_p10 = pneg %p2199_p2  ;;  %p1894_p11 = scmp.ne.s32.totalorder %s202_s8, %s1893_s13 }
  0x1a   : > { %p1901_p12 = scmp.lt.s32.totalorder %s202_s8, %s202_s8  ;;  %p1902_p9 = scmp.lt.s32.totalorder %s1893_s13, %s1893_s13 }
  0x1b   : > { %p1896_p5 = pnand %p1894_p11, %p1884_p10 }
  0x1c   : > { %p1903_p8 = por %p1902_p9, %p1901_p12 }
  0x1d   : > { %p1897_p1 = pneg %p1896_p5 }
  0x1f   : > { %p1904_p0 = pnand %p1903_p8, %p1897_p1 }
  0x21   : > { %1907 = shalt.err (!%p1904_p0)
}
  0x22   : > { %s2395_s0 = sld [smem:[#allocation18_spill]]  ;;  %s2417_s11 = smov (%p30_p6, %s29_s11), 0 }
  0x23   : > { %2396 = sst [smem:[#allocation16_spill]] %s2417_s11  ;;  %s2381_s16 = sand.u32 1, %s2066_s20  }
  0x24   : > { %s104_s17 = ssub.s32 %s2074_s22, %s2417_s11  ;;  %s1471_s25 = sshll.u32 %s2381_s16, 8 }
  0x25   : > { %p105_p8 = scmp.eq.s32.totalorder %s104_s17, 0  ;;  %s1585_s27 = sshll.u32 %s2074_s22, 8 }
  0x26   : > { %s232_s7 = scalar_lea.vmem [#allocation7], %s1471_s25  ;;  %s2398_s3 = sld [smem:[#allocation19_spill]] }
  0x27   : > { %s239_s13 = sshll.u32 %s232_s7, 4  ;;  %p1910_p9 = pneg %p2193_p4  ;;  %s240_s13 = int_to_ptr.vmem [resolvable:$true] %s239_s13 }
  0x28   : > { %1693 = dma.hbm_to_vmem [thread:$0]  (!%p2199_p2), %s2395_s0, 1024, %s202_s8, [#allocation3]  }
  0x29   : > { %s2226_s14 = scalar_select %p105_p8, %s2066_s20, %s107_s26  }
  0x2a   : > { %s2231_s8 = scalar_lea.sflag [#allocation3], %s228_s12  ;;  %s1921_s0 = scalar_lea.vmem %s240_s13, 4096 }
  0x2b   : > { %2397 = sst [smem:[#allocation17_spill]] %s2226_s14  ;;  %p1922_p12 = scmp.ne.s32.totalorder %s240_s13, %s1921_s0 }
  0x2c   : > { %s238_s30 = scalar_lea.hbm %s2398_s3, %s1585_s27  ;;  %s2081_s17 = smov [#allocation7]  }
  0x2d   : > { %p1924_p6 = pnand %p1922_p12, %p1910_p9  ;;  %s1926_s25 = sshll.u32 %s2081_s17, 4  ;;  %s1927_s25 = int_to_ptr.vmem [resolvable:$false] %s1926_s25 }
  0x2e   : > { %s1928_s26 = scalar_lea.vmem %s1927_s25, 8192  ;;  %p1929_p5 = scmp.lt.s32.totalorder %s240_s13, %s1927_s25 }
  0x2f   : > { %p1925_p11 = pneg %p1924_p6  ;;  %p1930_p1 = scmp.lt.s32.totalorder %s1928_s26, %s1921_s0 }
  0x31   : > { %p1931_p0 = por %p1930_p1, %p1929_p5 }
  0x33   : > { %p1932_p8 = pnand %p1931_p0, %p1925_p11 }
  0x35   : > { %1935 = shalt.err (!%p1932_p8)
}
  0x36   : > { %s2082_s23 = smov 512   ;;  %s2083_s12 = smov 256  }
  0x37   : > { %s2084_s27 = smov 16   ;;  %s2085_s7 = smov [#allocation5]  }
  0x38   : > { %1700 = dma.hbm_to_vmem [thread:$0]  (!%p2193_p4), %s238_s30, 4096, %s240_s13, %s2231_s8, %s2082_s23, %s2083_s12, %s2084_s27  }
  0x39   : > { %s211_s15 = sshll.u32 %s2085_s7, 4  ;;  %s212_s15 = int_to_ptr.vmem [resolvable:$true] %s211_s15 }
  0x3a   : > { %s1947_s16 = scalar_lea.vmem %s212_s15, 8192  ;;  %p1955_p5 = scmp.lt.s32.totalorder %s212_s15, %s212_s15 }
  0x3b   : > { %p1948_p12 = scmp.ne.s32.totalorder %s212_s15, %s1947_s16  ;;  %p1956_p11 = scmp.lt.s32.totalorder %s1947_s16, %s1947_s16 }
  0x3d   : > { %p1950_p6 = pnand %p1948_p12, %p1884_p10  ;;  %p1957_p1 = por %p1956_p11, %p1955_p5 }
  0x3f   : > { %p1951_p3 = pneg %p1950_p6 }
  0x41   : > { %p1958_p0 = pnand %p1957_p1, %p1951_p3 }
  0x43   : > { %1961 = shalt.err (!%p1958_p0)
}
  0x44   : > { %s2086_s0 = smov 64   ;;  %s2087_s30 = smov 4  }
  0x45   : > { %1696 = dma.hbm_to_vmem [thread:$0]  (!%p2199_p2), %s2372_s1, 8192, %s212_s15, [#allocation6], %s2086_s0, %s2086_s0, %s2087_s30  }
  0x46   : > { %s2399_s25 = sand.u32 1, %s2066_s20   ;;  %s1586_s23 = sshll.u32 %s2074_s22, 6 }
  0x47   : > { %s1474_s26 = sshll.u32 %s2399_s25, 2  ;;  %s259_s16 = scalar_lea.hbm %s2375_s4, %s1586_s23 }
  0x48   : > { %s253_s7 = scalar_lea.vmem [#allocation8], %s1474_s26  ;;  %s2088_s10 = smov [#allocation8]  }
  0x49   : > { %s261_s3 = sshll.u32 %s253_s7, 4  ;;  %s1980_s14 = sshll.u32 %s2088_s10, 4  ;;  %s262_s3 = int_to_ptr.vmem [resolvable:$true] %s261_s3  ;;  %s1981_s14 = int_to_ptr.vmem [resolvable:$false] %s1980_s14 }
  0x4a   : > { %s1975_s11 = scalar_lea.vmem %s262_s3, 64  ;;  %s1982_s15 = scalar_lea.vmem %s1981_s14, 128 }
  0x4b   : > { %p1976_p3 = scmp.ne.s32.totalorder %s262_s3, %s1975_s11  ;;  %p1983_p2 = scmp.lt.s32.totalorder %s262_s3, %s1981_s14 }
  0x4c   : > { %p1984_p12 = scmp.lt.s32.totalorder %s1982_s15, %s1975_s11 }
  0x4d   : > { %p1978_p10 = pnand %p1976_p3, %p1910_p9 }
  0x4e   : > { %p1985_p6 = por %p1984_p12, %p1983_p2 }
  0x4f   : > { %p1979_p8 = pneg %p1978_p10 }
  0x51   : > { %p1986_p5 = pnand %p1985_p6, %p1979_p8 }
  0x53   : > { %1989 = shalt.err (!%p1986_p5)
}
  0x54   : > { %1703 = dma.hbm_to_vmem [thread:$0]  (!%p2193_p4), %s259_s16, 64, %s262_s3, %s2231_s8  }
  0x55   : > { %270 = sbr.rel (%p2184_p13) target bundleno = 581 (0x245), region = 40  ;;  %p2400_p11 = scmp.eq.s32.totalorder (!%p2184_p13), %s2152_s24, 0 }
  0x5a   : > { %2041 = dma.done.wait (%p2400_p11), [#allocation3], 1024   ;;  %p2401_p9 = pmov %p2400_p11 }
  0x5c   : > { %2043 = vsyncadd (%p2401_p9), [#allocation3], 4294966272  ;;  %p2402_p1 = pmov %p2401_p9 }
  0x5e   : > { %2045 = dma.done.wait (%p2402_p1), [#allocation6], 8192   ;;  %p2403_p0 = pmov %p2402_p1 }
  0x5f   : > { %s280_s9 = sand.u32 1, %s2152_s24   ;;  %s2273_s3 = sand.u32 1, %s2062_s19  }
  0x60   : > { %2047 = vsyncadd (%p2403_p0), [#allocation6], 4294959104  ;;  %s1480_s6 = sshll.u32 %s2273_s3, 8  ;;  %s281_s11 = scalar_lea.sflag [#allocation3], %s280_s9 }
  0x61   : > { %s2276_s14 = scalar_lea.vmem [#allocation7], %s1480_s6 }
  0x62   : > { %2049 = dma.done.wait (%p2169_p7), %s281_s11, 4160  }
  0x63   : > { %2051 = vsyncadd (%p2169_p7), %s281_s11, 4294963136  ;;  %v1770_v0 = vld [vmem:[#allocation5 + $0x78] sm:$0xff]   ;;  %v1774_v4 = vld [vmem:[#allocation5 + $0x70] sm:$0xff]   ;;  %s1481_s8 = sshll.u32 %s2273_s3, 2  ;;  %s1482_s0 = sshll.u32 %s2273_s3, 5 }
  0x64   : > { %v1771_v1 = vld [vmem:[#allocation5 + $0xf8] sm:$0xff]   ;;  %1588 = vmatprep.subr.bf16.mxu0 %v1770_v0  ;;  %v1775_v5 = vld [vmem:[#allocation5 + $0xf0] sm:$0xff]   ;;  %v1778_v8 = vld [vmem:[#allocation5 + $0x68] sm:$0xff]   ;;  %s293_s30 = scalar_lea.vmem [#allocation8], %s1481_s8  ;;  %s1587_s13 = sshll.u32 %s2070_s21, 9 }
  0x65   : > { %v1772_v2 = vld [vmem:[#allocation5 + $0x38] sm:$0xff]   ;;  %1610 = vmatprep.subr.bf16.mxu1 %v1771_v1  ;;  %v1776_v6 = vld [vmem:[#allocation5 + $0x30] sm:$0xff]   ;;  %v1779_v9 = vld [vmem:[#allocation5 + $0xe8] sm:$0xff]   ;;  %s324_s17 = scalar_lea.vmem [#allocation9], %s1482_s0  ;;  %s2323_s12 = scalar_lea.hbm %s2376_s5, %s1587_s13 }
  0x66   : > { %v1773_v3 = vld [vmem:[#allocation5 + $0xb8] sm:$0xff]   ;;  %1589 = vmatpush3.bf16.msra.mxu0 %v1772_v2  ;;  %v1777_v7 = vld [vmem:[#allocation5 + $0xb0] sm:$0xff]   ;;  %v1780_v10 = vld [vmem:[#allocation5 + $0x28] sm:$0xff]   ;;  %s1343_s25 = sshll.u32 %s324_s17, 4  ;;  %s1327_s21 = scalar_lea.sflag [#allocation4], %s2273_s3  ;;  %s2325_s25 = int_to_ptr.vmem [resolvable:$true] %s1343_s25 }
  0x67   : > { %1611 = vmatpush3.bf16.msra.mxu1 %v1773_v3  ;;  %1590 = vmatprep.subr.bf16.mxu0 %v1774_v4  ;;  %v1781_v11 = vld [vmem:[#allocation5 + $0xa8] sm:$0xff]   ;;  %v1782_v12 = vld [vmem:[#allocation5 + $0x60] sm:$0xff]   ;;  %v1786_v16 = vld [vmem:[#allocation5 + $0x58] sm:$0xff]   ;;  %s1990_s27 = scalar_lea.vmem %s2325_s25, 512  ;;  %p2404_p13 = scmp.ne.s32.totalorder %s2389_s29, 0 }
  0x68   : > { %1612 = vmatprep.subr.bf16.mxu1 %v1775_v5  ;;  %v1783_v13 = vld [vmem:[#allocation5 + $0xe0] sm:$0xff]   ;;  %v1787_v17 = vld [vmem:[#allocation5 + $0xd8] sm:$0xff]   ;;  %v1790_v20 = vld [vmem:[#allocation5 + $0x50] sm:$0xff]   ;;  %p1991_p7 = scmp.ne.s32.totalorder %s2325_s25, %s1990_s27  ;;  %s2090_s16 = smov [#allocation9]  }
  0x69   : > { %v1784_v14 = vld [vmem:[#allocation5 + $0x20] sm:$0xff]   ;;  %v1788_v18 = vld [vmem:[#allocation5 + $0x18] sm:$0xff]   ;;  %v1791_v21 = vld [vmem:[#allocation5 + $0xd0] sm:$0xff]   ;;  %s1994_s7 = sshll.u32 %s2090_s16, 4  ;;  %s1995_s7 = int_to_ptr.vmem [resolvable:$false] %s1994_s7 }
  0x6a   : > { %1591 = vmatpush3.bf16.msra.mxu0 %v1776_v6  ;;  %v1785_v15 = vld [vmem:[#allocation5 + $0xa0] sm:$0xff]   ;;  %v1789_v19 = vld [vmem:[#allocation5 + $0x98] sm:$0xff]   ;;  %v1792_v22 = vld [vmem:[#allocation5 + $0x10] sm:$0xff]   ;;  %p1992_p4 = pnand %p1991_p7, %p2404_p13  ;;  %s1996_s10 = scalar_lea.vmem %s1995_s7, 1024 }
  0x6b   : > { %1613 = vmatpush3.bf16.msra.mxu1 %v1777_v7  ;;  %1592 = vmatprep.subr.bf16.mxu0 %v1778_v8  ;;  %v1793_v23 = vld [vmem:[#allocation5 + $0x90] sm:$0xff]   ;;  %v1794_v24 = vld [vmem:[#allocation5 + $0x48] sm:$0xff]   ;;  %v1798_v28 = vld [vmem:[#allocation5 + $0x40] sm:$0xff]   ;;  %p1997_p10 = scmp.lt.s32.totalorder %s2325_s25, %s1995_s7  ;;  %p1998_p8 = scmp.lt.s32.totalorder %s1996_s10, %s1990_s27 }
  0x6c   : > { %1614 = vmatprep.subr.bf16.mxu1 %v1779_v9  ;;  %v1795_v25 = vld [vmem:[#allocation5 + $0xc8] sm:$0xff]   ;;  %v1799_v29 = vld [vmem:[#allocation5 + $0xc0] sm:$0xff]   ;;  %v332_v33 = vld [vmem:[#allocation2 + $0x18] sm:$0xff]  ;;  %p1993_p3 = pneg %p1992_p4 }
  0x6d   : > { %v1796_v26 = vld [vmem:[#allocation5 + $0x8] sm:$0xff]   ;;  %v1800_v30 = vld [vmem:[#allocation5] sm:$0xff]   ;;  %v340_v36 = vpack.c.bf16 %v332_v33, %v332_v33  ;;  %v331_v38 = vld [vmem:[#allocation2 + $0x10] sm:$0xff]  ;;  %p1999_p2 = por %p1998_p8, %p1997_p10 }
  0x6e   : > { %1593 = vmatpush3.bf16.msra.mxu0 %v1780_v10  ;;  %v1797_v27 = vld [vmem:[#allocation5 + $0x88] sm:$0xff]   ;;  %v1801_v31 = vld [vmem:[#allocation5 + $0x80] sm:$0xff]   ;;  %v339_v39 = vpack.c.bf16 %v331_v38, %v331_v38  ;;  %v1802_v40 = vld [vmem:[#allocation5 + $0x178] sm:$0xff]  }
  0x6f   : > { %1615 = vmatpush3.bf16.msra.mxu1 %v1781_v11  ;;  %1594 = vmatprep.subr.bf16.mxu0 %v1782_v12  ;;  %v330_v32 = vld [vmem:[#allocation2 + $0x8] sm:$0xff]  ;;  %v329_v34 = vld [vmem:[#allocation2] sm:$0xff]  ;;  %v1803_v41 = vld [vmem:[#allocation5 + $0x1f8] sm:$0xff]   ;;  %p2000_p12 = pnand %p1999_p2, %p1993_p3 }
  0x70   : > { %1616 = vmatprep.subr.bf16.mxu1 %v1783_v13  ;;  %v338_v35 = vpack.c.bf16 %v330_v32, %v330_v32  ;;  %v337_v37 = vpack.c.bf16 %v329_v34, %v329_v34  ;;  %936 = vmatprep.mubr.bf16.mxu1 %v340_v36  ;;  %v1804_v42 = vld [vmem:[#allocation5 + $0x138] sm:$0xff]   ;;  %v1806_v44 = vld [vmem:[#allocation5 + $0x170] sm:$0xff]   ;;  %v1810_v48 = vld [vmem:[#allocation5 + $0x168] sm:$0xff]  }
  0x71   : > { %v1805_v43 = vld [vmem:[#allocation5 + $0x1b8] sm:$0xff]   ;;  %v1807_v45 = vld [vmem:[#allocation5 + $0x1f0] sm:$0xff]   ;;  %v1811_v49 = vld [vmem:[#allocation5 + $0x1e8] sm:$0xff]  }
  0x72   : > { %1595 = vmatpush3.bf16.msra.mxu0 %v1784_v14  ;;  %896 = vmatprep.mubr.bf16.mxu0 %v338_v35  ;;  %v1808_v46 = vld [vmem:[#allocation5 + $0x130] sm:$0xff]   ;;  %v1812_v50 = vld [vmem:[#allocation5 + $0x128] sm:$0xff]   ;;  %v1814_v52 = vld [vmem:[#allocation5 + $0x160] sm:$0xff]  }
  0x73   : > { %1617 = vmatpush3.bf16.msra.mxu1 %v1785_v15  ;;  %1596 = vmatprep.subr.bf16.mxu0 %v1786_v16  ;;  %v1809_v47 = vld [vmem:[#allocation5 + $0x1b0] sm:$0xff]   ;;  %v1813_v51 = vld [vmem:[#allocation5 + $0x1a8] sm:$0xff]   ;;  %v1815_v53 = vld [vmem:[#allocation5 + $0x1e0] sm:$0xff]  }
  0x74   : > { %1618 = vmatprep.subr.bf16.mxu1 %v1787_v17  ;;  %v1816_v54 = vld [vmem:[#allocation5 + $0x120] sm:$0xff]   ;;  %v1818_v56 = vld [vmem:[#allocation5 + $0x158] sm:$0xff]   ;;  %v1822_v60 = vld [vmem:[#allocation5 + $0x150] sm:$0xff]  }
  0x75   : > { %v1817_v55 = vld [vmem:[#allocation5 + $0x1a0] sm:$0xff]   ;;  %v1819_v57 = vld [vmem:[#allocation5 + $0x1d8] sm:$0xff]   ;;  %v1823_v61 = vld [vmem:[#allocation5 + $0x1d0] sm:$0xff]  }
  0x76   : > { %1597 = vmatpush3.bf16.msra.mxu0 %v1788_v18  ;;  %v1820_v58 = vld [vmem:[#allocation5 + $0x118] sm:$0xff]   ;;  %v1824_v62 = vld [vmem:[#allocation5 + $0x110] sm:$0xff]   ;;  %v1826_v0 = vld [vmem:[#allocation5 + $0x148] sm:$0xff]  }
  0x77   : > { %1619 = vmatpush3.bf16.msra.mxu1 %v1789_v19  ;;  %1598 = vmatprep.subr.bf16.mxu0 %v1790_v20  ;;  %v1821_v59 = vld [vmem:[#allocation5 + $0x198] sm:$0xff]   ;;  %v1825_v63 = vld [vmem:[#allocation5 + $0x190] sm:$0xff]   ;;  %v1827_v1 = vld [vmem:[#allocation5 + $0x1c8] sm:$0xff]  }
  0x78   : > { %1620 = vmatprep.subr.bf16.mxu1 %v1791_v21  ;;  %v1828_v2 = vld [vmem:[#allocation5 + $0x108] sm:$0xff]   ;;  %v1830_v4 = vld [vmem:[#allocation5 + $0x140] sm:$0xff]   ;;  %v336_v9 = vld [vmem:[#allocation2 + $0x38] sm:$0xff] }
  0x79   : > { %v1829_v3 = vld [vmem:[#allocation5 + $0x188] sm:$0xff]   ;;  %v1831_v5 = vld [vmem:[#allocation5 + $0x1c0] sm:$0xff]   ;;  %v344_v11 = vpack.c.bf16 %v336_v9, %v336_v9  ;;  %v335_v13 = vld [vmem:[#allocation2 + $0x30] sm:$0xff] }
  0x7a   : > { %1599 = vmatpush3.bf16.msra.mxu0 %v1792_v22  ;;  %v1832_v6 = vld [vmem:[#allocation5 + $0x100] sm:$0xff]   ;;  %v334_v8 = vld [vmem:[#allocation2 + $0x28] sm:$0xff]  ;;  %v343_v15 = vpack.c.bf16 %v335_v13, %v335_v13 }
  0x7b   : > { %1621 = vmatpush3.bf16.msra.mxu1 %v1793_v23  ;;  %1600 = vmatprep.subr.bf16.mxu0 %v1794_v24  ;;  %v1833_v7 = vld [vmem:[#allocation5 + $0x180] sm:$0xff]   ;;  %v342_v10 = vpack.c.bf16 %v334_v8, %v334_v8  ;;  %v1837_v18 = vld [vmem:[%s2276_s14 + $0xe8] ss:$16 sps:$4 sm:$0xff]   ;;  %v1839_v19 = vld [vmem:[%s2276_s14 + $0xec] ss:$16 sps:$4 sm:$0xff]  }
  0x7c   : > { %1622 = vmatprep.subr.bf16.mxu1 %v1795_v25  ;;  %v333_v12 = vld [vmem:[#allocation2 + $0x20] sm:$0xff]  ;;  %v1845_v21 = vld [vmem:[%s2276_s14 + $0xcc] ss:$16 sps:$4 sm:$0xff]   ;;  %v1843_v23 = vld [vmem:[%s2276_s14 + $0xc8] ss:$16 sps:$4 sm:$0xff]  }
  0x7d   : > { %v341_v14 = vpack.c.bf16 %v333_v12, %v333_v12  ;;  %v1834_v16 = vld [vmem:[%s2276_s14 + $0xe0] ss:$16 sps:$4 sm:$0xff]   ;;  %v1836_v17 = vld [vmem:[%s2276_s14 + $0xe4] ss:$16 sps:$4 sm:$0xff]   ;;  %v1851_v25 = vld [vmem:[%s2276_s14 + $0xac] ss:$16 sps:$4 sm:$0xff]   ;;  %v1060_v12 = vlaneseq }
  0x7e   : > { %1601 = vmatpush3.bf16.msra.mxu0 %v1796_v26  ;;  %v1842_v20 = vld [vmem:[%s2276_s14 + $0xc4] ss:$16 sps:$4 sm:$0xff]   ;;  %v1840_v22 = vld [vmem:[%s2276_s14 + $0xc0] ss:$16 sps:$4 sm:$0xff]   ;;  %v1863_v33 = vld [vmem:[%s2276_s14 + $0x6c] ss:$16 sps:$4 sm:$0xff]  }
  0x7f   : > { %1623 = vmatpush3.bf16.msra.mxu1 %v1797_v27  ;;  %1602 = vmatprep.subr.bf16.mxu0 %v1798_v28  ;;  %v1848_v24 = vld [vmem:[%s2276_s14 + $0xa4] ss:$16 sps:$4 sm:$0xff]   ;;  %v1846_v26 = vld [vmem:[%s2276_s14 + $0xa0] ss:$16 sps:$4 sm:$0xff]   ;;  %v1849_v27 = vld [vmem:[%s2276_s14 + $0xa8] ss:$16 sps:$4 sm:$0xff]  }
  0x80   : > { %1624 = vmatprep.subr.bf16.mxu1 %v1799_v29  ;;  %v1854_v28 = vld [vmem:[%s2276_s14 + $0x84] ss:$16 sps:$4 sm:$0xff]   ;;  %v1857_v29 = vld [vmem:[%s2276_s14 + $0x8c] ss:$16 sps:$4 sm:$0xff]   ;;  %v1858_v34 = vld [vmem:[%s2276_s14 + $0x60] ss:$16 sps:$4 sm:$0xff]  }
  0x81   : > { %v1860_v32 = vld [vmem:[%s2276_s14 + $0x64] ss:$16 sps:$4 sm:$0xff]   ;;  %v1861_v35 = vld [vmem:[%s2276_s14 + $0x68] ss:$16 sps:$4 sm:$0xff]   ;;  %v1864_v38 = vld [vmem:[%s2276_s14 + $0x40] ss:$16 sps:$4 sm:$0xff]  }
  0x82   : > { %1603 = vmatpush3.bf16.msra.mxu0 %v1800_v30  ;;  %v1852_v30 = vld [vmem:[%s2276_s14 + $0x80] ss:$16 sps:$4 sm:$0xff]   ;;  %v1866_v36 = vld [vmem:[%s2276_s14 + $0x44] ss:$16 sps:$4 sm:$0xff]   ;;  %v1061_v13 = vshrl.u32 %v1060_v12, 7 }
  0x83   : > { %1625 = vmatpush3.bf16.msra.mxu1 %v1801_v31  ;;  %1632 = vmatprep.subr.bf16.mxu0 %v1802_v40  ;;  %v1855_v31 = vld [vmem:[%s2276_s14 + $0x88] ss:$16 sps:$4 sm:$0xff]   ;;  %v1872_v40 = vld [vmem:[%s2276_s14 + $0x24] ss:$16 sps:$4 sm:$0xff]  }
  0x84   : > { %1654 = vmatprep.subr.bf16.mxu1 %v1803_v41  ;;  %v1875_v41 = vld [vmem:[%s2276_s14 + $0x2c] ss:$16 sps:$4 sm:$0xff]  }
  0x85   : > { %897 = vmatmul.mubr.bf16.vlgmr.msra.gmra.mxu0 %v337_v37  ;;  %v1869_v37 = vld [vmem:[%s2276_s14 + $0x4c] ss:$16 sps:$4 sm:$0xff]  }
  0x86   : > { %937 = vmatmul.mubr.bf16.vlgmr.msra.gmra.mxu1 %v339_v39  ;;  %1633 = vmatpush3.bf16.msra.mxu0 %v1804_v42  ;;  %v1867_v39 = vld [vmem:[%s2276_s14 + $0x48] ss:$16 sps:$4 sm:$0xff]   ;;  %v1870_v42 = vld [vmem:[%s2276_s14 + $0x20] ss:$16 sps:$4 sm:$0xff]  }
  0x87   : > { %1655 = vmatpush3.bf16.msra.mxu1 %v1805_v43  ;;  %1634 = vmatprep.subr.bf16.mxu0 %v1806_v44  ;;  %v1873_v43 = vld [vmem:[%s2276_s14 + $0x28] ss:$16 sps:$4 sm:$0xff]   ;;  %v1878_v44 = vld [vmem:[%s2276_s14 + $0x4] ss:$16 sps:$4 sm:$0xff]  }
  0x88   : > { %1656 = vmatprep.subr.bf16.mxu1 %v1807_v45  ;;  %976 = vmatprep.mubr.bf16.mxu0 %v342_v10  ;;  %v1881_v45 = vld [vmem:[%s2276_s14 + $0xc] ss:$16 sps:$4 sm:$0xff]  }
  0x89   : > { %1016 = vmatprep.mubr.bf16.mxu1 %v344_v11 }
  0x8a   : > { %1635 = vmatpush3.bf16.msra.mxu0 %v1808_v46  ;;  %v1876_v46 = vld [vmem:[%s2276_s14] ss:$16 sps:$4 sm:$0xff]  }
  0x8b   : > { %1657 = vmatpush3.bf16.msra.mxu1 %v1809_v47  ;;  %1636 = vmatprep.subr.bf16.mxu0 %v1810_v48  ;;  %v1879_v47 = vld [vmem:[%s2276_s14 + $0x8] ss:$16 sps:$4 sm:$0xff]   ;;  %v2089_v48 = vmov 0  }
  0x8c   : > { %1658 = vmatprep.subr.bf16.mxu1 %v1811_v49 }
  0x8e   : > { %1637 = vmatpush3.bf16.msra.mxu0 %v1812_v50 }
  0x8f   : > { %1659 = vmatpush3.bf16.msra.mxu1 %v1813_v51  ;;  %1638 = vmatprep.subr.bf16.mxu0 %v1814_v52 }
  0x90   : > { %1660 = vmatprep.subr.bf16.mxu1 %v1815_v53 }
  0x92   : > { %1639 = vmatpush3.bf16.msra.mxu0 %v1816_v54 }
  0x93   : > { %1661 = vmatpush3.bf16.msra.mxu1 %v1817_v55  ;;  %1640 = vmatprep.subr.bf16.mxu0 %v1818_v56 }
  0x94   : > { %1662 = vmatprep.subr.bf16.mxu1 %v1819_v57 }
  0x96   : > { %1641 = vmatpush3.bf16.msra.mxu0 %v1820_v58  ;;  %v1483_v58 = vld [vmem:[%s2373_s2] ss:$0 sm:$0xff] }
  0x97   : > { %1663 = vmatpush3.bf16.msra.mxu1 %v1821_v59  ;;  %1642 = vmatprep.subr.bf16.mxu0 %v1822_v60 }
  0x98   : > { %1664 = vmatprep.subr.bf16.mxu1 %v1823_v61 }
  0x9a   : > { %1643 = vmatpush3.bf16.msra.mxu0 %v1824_v62 }
  0x9b   : > { %1665 = vmatpush3.bf16.msra.mxu1 %v1825_v63  ;;  %1644 = vmatprep.subr.bf16.mxu0 %v1826_v0 }
  0x9c   : > { %1666 = vmatprep.subr.bf16.mxu1 %v1827_v1 }
  0x9e   : > { %1645 = vmatpush3.bf16.msra.mxu0 %v1828_v2 }
  0x9f   : > { %1667 = vmatpush3.bf16.msra.mxu1 %v1829_v3  ;;  %1646 = vmatprep.subr.bf16.mxu0 %v1830_v4 }
  0xa0   : > { %1668 = vmatprep.subr.bf16.mxu1 %v1831_v5 }
  0xa2   : > { %1647 = vmatpush3.bf16.msra.mxu0 %v1832_v6 }
  0xa3   : > { %1669 = vmatpush3.bf16.msra.mxu1 %v1833_v7  ;;  %1240 = vmatprep.subr.bf16.mxu0 %v1836_v17  ;;  %v1066_v17 = vsub.s32 1, %v1061_v13 }
  0xa4   : > { %1281 = vmatprep.subr.bf16.mxu1 %v1839_v19 }
  0xa5   : > { %977 = vmatmul.mubr.bf16.vlgmr.msra.gmra.mxu0 %v341_v14  ;;  %v1062_v14 = vsub.s32 0, %v1061_v13 }
  0xa6   : > { %1017 = vmatmul.mubr.bf16.vlgmr.msra.gmra.mxu1 %v343_v15  ;;  %1241 = vmatpush1.bf16.msra.mxu0 %v1834_v16  ;;  %v1070_v15 = vsub.s32 2, %v1061_v13  ;;  %v1058_v16 = vld [vmem:[%s293_s30] sm:$0xf] }
  0xa7   : > { %1282 = vmatpush1.bf16.msra.mxu1 %v1837_v18  ;;  %1242 = vmatprep.subr.bf16.mxu0 %v1842_v20  ;;  %v1074_v18 = vsub.s32 3, %v1061_v13  ;;  %v1063_v19 = vrot.slane %v1058_v16, %v1062_v14 }
  0xa8   : > { %1283 = vmatprep.subr.bf16.mxu1 %v1845_v21  ;;  %1272 = vmatprep.mubr.bf16.mxu0 %v2089_v48  ;;  %v1071_v20 = vrot.slane %v1058_v16, %v1070_v15  ;;  %v1067_v21 = vrot.slane %v1058_v16, %v1066_v17 }
  0xa9   : > { %1313 = vmatprep.mubr.bf16.mxu1 %v2089_v48 }
  0xaa   : > { %1243 = vmatpush1.bf16.msra.mxu0 %v1840_v22  ;;  %v1075_v22 = vrot.slane %v1058_v16, %v1074_v18 }
  0xab   : > { %1284 = vmatpush1.bf16.msra.mxu1 %v1843_v23  ;;  %1244 = vmatprep.subr.bf16.mxu0 %v1848_v24 }
  0xac   : > { %1285 = vmatprep.subr.bf16.mxu1 %v1851_v25 }
  0xae   : > { %1245 = vmatpush1.bf16.msra.mxu0 %v1846_v26 }
  0xaf   : > { %1286 = vmatpush1.bf16.msra.mxu1 %v1849_v27  ;;  %1246 = vmatprep.subr.bf16.mxu0 %v1854_v28 }
  0xb0   : > { %1287 = vmatprep.subr.bf16.mxu1 %v1857_v29 }
  0xb2   : > { %1247 = vmatpush1.bf16.msra.mxu0 %v1852_v30 }
  0xb3   : > { %1288 = vmatpush1.bf16.msra.mxu1 %v1855_v31  ;;  %1248 = vmatprep.subr.bf16.mxu0 %v1860_v32 }
  0xb4   : > { %1289 = vmatprep.subr.bf16.mxu1 %v1863_v33 }
  0xb6   : > { %1249 = vmatpush1.bf16.msra.mxu0 %v1858_v34 }
  0xb7   : > { %1290 = vmatpush1.bf16.msra.mxu1 %v1861_v35  ;;  %1250 = vmatprep.subr.bf16.mxu0 %v1866_v36 }
  0xb8   : > { %1291 = vmatprep.subr.bf16.mxu1 %v1869_v37 }
  0xba   : > { %1251 = vmatpush1.bf16.msra.mxu0 %v1864_v38 }
  0xbb   : > { %1292 = vmatpush1.bf16.msra.mxu1 %v1867_v39  ;;  %1252 = vmatprep.subr.bf16.mxu0 %v1872_v40 }
  0xbc   : > { %1293 = vmatprep.subr.bf16.mxu1 %v1875_v41 }
  0xbe   : > { %1253 = vmatpush1.bf16.msra.mxu0 %v1870_v42 }
  0xbf   : > { %1294 = vmatpush1.bf16.msra.mxu1 %v1873_v43  ;;  %1254 = vmatprep.subr.bf16.mxu0 %v1878_v44 }
  0xc0   : > { %1295 = vmatprep.subr.bf16.mxu1 %v1881_v45 }
  0xc2   : > { %1255 = vmatpush1.bf16.msra.mxu0 %v1876_v46 }
  0xc3   : > { %1296 = vmatpush1.bf16.msra.mxu1 %v1879_v47 }
 0x145   : > { %v1604_v49 = vpop.f32.mrf.mxu0 }
 0x146   : > { %v1626_v50 = vpop.f32.mrf.mxu1 }
 0x147   : > { %v1605_v51 = vpop.f32.mrf.mxu0 }
 0x148   : > { %v1627_v52 = vpop.f32.mrf.mxu1  ;;  %v1606_v57 = vadd.f32 %v1605_v51, %v1604_v49 }
 0x149   : > { %v1607_v53 = vpop.f32.mrf.mxu0  ;;  %v1628_v60 = vadd.f32 %v1627_v52, %v1626_v50 }
 0x14a   : > { %v1629_v54 = vpop.f32.mrf.mxu1  ;;  %v899_v59 = vadd.f32 %v1606_v57, %v1483_v58 }
 0x14b   : > { %v1608_v55 = vpop.f32.mrf.mxu0 }
 0x14c   : > { %v1630_v56 = vpop.f32.mrf.mxu1  ;;  %v939_v0 = vadd.f32 %v1628_v60, %v899_v59 }
 0x165   : > { %v1648_v61 = vpop.f32.mrf.mxu0 }
 0x166   : > { %v1670_v62 = vpop.f32.mrf.mxu1 }
 0x167   : > { %v1649_v63 = vpop.f32.mrf.mxu0 }
 0x168   : > { %v1650_v1 = vadd.f32 %v1649_v63, %v1648_v61  ;;  %v1671_v2 = vpop.f32.mrf.mxu1 }
 0x169   : > { %v1651_v3 = vpop.f32.mrf.mxu0  ;;  %v1672_v5 = vadd.f32 %v1671_v2, %v1670_v62 }
 0x16a   : > { %v979_v4 = vadd.f32 %v1650_v1, %v939_v0  ;;  %v1673_v6 = vpop.f32.mrf.mxu1 }
 0x16b   : > { %v1652_v7 = vpop.f32.mrf.mxu0 }
 0x16c   : > { %v1019_v8 = vadd.f32 %v1672_v5, %v979_v4  ;;  %v1674_v9 = vpop.f32.mrf.mxu1 }
 0x16e   : > { %v1024_v10 = vmax.f32 %v1019_v8, 0.0 }
 0x170   : > { %v1025_v11 = vpack.c.bf16 %v1024_v10, %v1024_v10 }
 0x172   : > { %1273 = vmatmul.mubr.bf16.vlgmr.msra.gmra.mxu0 %v1025_v11  ;;  %1314 = vmatmul.mubr.bf16.vlgmr.msra.gmra.mxu1 %v1025_v11 }
 0x232   : > { %v1274_v23 = vpop.f32.mrf.mxu0  ;;  %v1315_v24 = vpop.f32.mrf.mxu1 }
 0x233   : > { %v1275_v25 = vadd.f32 %v1274_v23, %v1063_v19  ;;  %v1316_v26 = vadd.f32 %v1315_v24, %v1071_v20 }
 0x234   : > { %v1276_v27 = vpop.f32.mrf.mxu0  ;;  %v1317_v28 = vpop.f32.mrf.mxu1 }
 0x235   : > { %1322 = vst [vmem:[%s324_s17] sm:$0xff] %v1275_v25  ;;  %1324 = vst [vmem:[%s324_s17 + $0x10] sm:$0xff] %v1316_v26  ;;  %v1277_v29 = vadd.f32 %v1276_v27, %v1067_v21  ;;  %v1318_v30 = vadd.f32 %v1317_v28, %v1075_v22 }
 0x236   : > { %v1278_v31 = vpop.f32.mrf.mxu0  ;;  %v1319_v32 = vpop.f32.mrf.mxu1 }
 0x237   : > { %1323 = vst [vmem:[%s324_s17 + $0x8] sm:$0xff] %v1277_v29  ;;  %1325 = vst [vmem:[%s324_s17 + $0x18] sm:$0xff] %v1318_v30 }
 0x238   : > { %v1279_v33 = vpop.f32.mrf.mxu0  ;;  %v1320_v34 = vpop.f32.mrf.mxu1 }
 0x239   : > { %2003 = shalt.err (!%p2000_p12)
}
 0x23a   : > { %s2004_s15 = scalar_lea.hbm %s2323_s12, 512  ;;  %s2008_s6 = scalar_lea.hbm %s2376_s5, 1024 }
 0x23b   : > { %p2005_p6 = scmp.ne.s32.totalorder %s2323_s12, %s2004_s15  ;;  %p2009_p9 = scmp.lt.s32.totalorder %s2323_s12, %s2376_s5 }
 0x23c   : > { %p2010_p1 = scmp.lt.s32.totalorder %s2008_s6, %s2004_s15 }
 0x23d   : > { %p2006_p5 = pnand %p2005_p6, %p2404_p13 }
 0x23e   : > { %p2011_p0 = por %p2010_p1, %p2009_p9 }
 0x23f   : > { %p2007_p11 = pneg %p2006_p5 }
 0x241   : > { %p2012_p7 = pnand %p2011_p0, %p2007_p11 }
 0x243   : > { %2015 = shalt.err (!%p2012_p7)
}
 0x244   : > { %1688 = dma.vmem_to_hbm [thread:$0]  (%p2404_p13), %s2325_s25, 512, %s2323_s12, %s1327_s21  }
 0x245 PF: > { %s2405_s24 = sld [smem:[#allocation15_spill]]  ;;  %s1355_s8 = sand.u32 1, %s2058_s18  }
 0x246   : > { %s2406_s28 = sld [smem:[#allocation14_spill]]  ;;  %s1356_s0 = scalar_lea.sflag [#allocation4], %s1355_s8 }
 0x24b   : > { %p2407_p4 = scmp.ne.s32.totalorder %s2405_s24, 0 }
 0x24c   : > { %p2408_p3 = scmp.ge.s32.totalorder %s2406_s28, 2 }
 0x24e   : > { %p1705_p10 = pnand %p2408_p3, %p2407_p4 }
 0x250   : > { %p1706_p8 = pneg %p1705_p10 }
 0x252   : > { %2053 = dma.done.wait (%p1706_p8), %s1356_s0, 512  }
 0x253   : > { %2055 = vsyncadd (%p1706_p8), %s1356_s0, 4294966784  ;;  %s20_s23 = sadd.s32 1, %s2406_s28   ;;  %s2409_s29 = sld [smem:[#allocation17_spill]] }
 0x254   : > { %p17_p2 = scmp.ge.s32.totalorder %s20_s23, 4   ;;  %s2410_s30 = sld [smem:[#allocation16_spill]] }
 0x255   : > { %s2411_s18 = smov %s2062_s19  ;;  %s2412_s19 = smov %s2066_s20 }
 0x256   : > { %s2414_s21 = smov %s2074_s22  ;;  %19 = sbr.rel (!%p17_p2) target bundleno = 9 (0x9), region = 104 }
 0x259   : > { %s2413_s20 = smov %s2409_s29 }
 0x25a   : > { %s2415_s22 = smov %s2410_s30 }
 0x25b   :  { %1361 = vsyncpa [#allocation3], 1 }
 0x25c   :  { %1363 = vsyncpa [#allocation3 + $0x1], 1 }
 0x25d   :  { %1364 = vsyncpa [#allocation6], 1 }
 0x25e   :  { %1365 = vsyncpa [#allocation4], 1 }
 0x25f   :  { %1367 = vsyncpa [#allocation4 + $0x1], 1 }

// kernel: tpu_custom_call.1
= control target key start
LH: loop header
LB: loop body
LE: loop exit
PB: predicated region body
PF: predicated region fallthrough
CT: control target
= control target key end

     0   :  { %s2371_s0 = inlined_call_operand.hbm [shape: f32[8,1024], index: 0, kind: input, shape index: {}]   ;;  %s2372_s1 = inlined_call_operand.hbm [shape: bf16[1024,128], index: 1, kind: input, shape index: {}]   ;;  %s2373_s2 = inlined_call_operand.vmem [shape: f32[1,128], index: 2, kind: input, shape index: {}]   ;;  %s2374_s3 = inlined_call_operand.hbm [shape: bf16[128,1024], index: 3, kind: input, shape index: {}]   ;;  %s2375_s4 = inlined_call_operand.hbm [shape: f32[1,1024], index: 4, kind: input, shape index: {}]   ;;  %s2376_s5 = inlined_call_operand.hbm [shape: f32[8,1024], index: 5, kind: output, shape index: {}]  }
   0x1   :  { %2384 = sst [smem:[#allocation18_spill]] %s2371_s0 }
   0x2   :  { %2385 = sst [smem:[#allocation19_spill]] %s2374_s3 }
   0x3   :  { %10 = vsyncpa [#allocation3], 0 }
   0x4   :  { %11 = vsyncpa [#allocation6], 0 }
   0x5   :  { %12 = vsyncpa [#allocation4], 0 }
   0x6   :  { %14 = vsyncpa [#allocation4 + $0x1], 0  ;;  %s2121_s18 = smov 0   ;;  %s2123_s19 = smov 0  }
   0x7   :  { %s2125_s20 = smov 0   ;;  %s2127_s21 = smov 0  }
   0x8   :  { %s2129_s22 = smov 0   ;;  %s2131_s23 = smov 0  }
   0x9 LB: > { %2386 = sst [smem:[#allocation14_spill]] %s2078_s23  ;;  %s2152_s24 = sadd.s32 4294967295, %s2078_s23   ;;  %s2078_s23 = sphi %s2131_s23, %s20_s23   ;;  %s2074_s22 = sphi %s2129_s22, %s2415_s22   ;;  %s2070_s21 = sphi %s2127_s21, %s2414_s21   ;;  %s2066_s20 = sphi %s2125_s20, %s2413_s20   ;;  %s2062_s19 = sphi %s2123_s19, %s2412_s19   ;;  %s2058_s18 = sphi %s2121_s18, %s2411_s18  }
   0xa   : > { %s1466_s25 = sadd.s32 4294967294, %s2078_s23   ;;  %s107_s26 = sadd.s32 1, %s2066_s20 }
   0xb   : > { %p114_p0 = scmp.ne.s32.totalorder %s2066_s20, %s2062_s19  ;;  %p115_p1 = scmp.eq.s32.totalorder %s2078_s23, 0 }
   0xc   : > { %p120_p2 = scmp.ne.s32.totalorder %s2062_s19, %s2058_s18  ;;  %p2382_p3 = scmp.eq.s32.totalorder %s2152_s24, 0 }
   0xd   : > { %p172_p4 = scmp.eq.s32.totalorder %s2152_s24, 1  ;;  %p2163_p5 = por %p115_p1, %p114_p0 }
   0xe   : > { %p178_p6 = scmp.eq.s32.totalorder %s1466_s25, 1  ;;  %p2169_p7 = por %p2382_p3, %p120_p2 }
   0xf   : > { %p2173_p8 = por %p172_p4, %p114_p0  ;;  %p1467_p10 = scmp.ge.s32.totalorder %s2078_s23, 1 }
  0x10   : > { %p2177_p9 = por %p178_p6, %p120_p2  ;;  %p185_p11 = scmp.lt.s32.totalorder %s2078_s23, 3 }
  0x11   : > { %s2389_s29 = scalar_select %p2173_p8, 1, 0 }
  0x12   : > { %s2390_s30 = scalar_select %p2177_p9, 1, 0 }
  0x13   : > { %p2184_p13 = pnand %p1467_p10, %p185_p11  ;;  %s2080_s7 = smov [#allocation2]  }
  0x14   : > { %2391 = sst [smem:[#allocation15_spill]] %s2390_s30  ;;  %s201_s8 = sshll.u32 %s2080_s7, 4  ;;  %s202_s8 = int_to_ptr.vmem [resolvable:$true] %s201_s8 }
  0x15   : > { %p1710_p1 = scmp.lt.s32.totalorder %s2078_s23, 2  ;;  %p1690_p0 = pneg %p2184_p13 }
  0x16   : > { %s29_s11 = sadd.s32 1, %s2074_s22  ;;  %s228_s12 = sand.u32 1, %s2078_s23  }
  0x17   : > { %p2193_p4 = pnand %p1710_p1, %p2163_p5  ;;  %p2199_p2 = pnand %p1690_p0, %p2382_p3 }
  0x18   : > { %p30_p6 = scmp.ge.s32.totalorder %s29_s11, 2  ;;  %s1893_s13 = scalar_lea.vmem %s202_s8, 1024 }
  0x19   : > { %p1884_p10 = pneg %p2199_p2  ;;  %p1894_p11 = scmp.ne.s32.totalorder %s202_s8, %s1893_s13 }
  0x1a   : > { %p1901_p12 = scmp.lt.s32.totalorder %s202_s8, %s202_s8  ;;  %p1902_p9 = scmp.lt.s32.totalorder %s1893_s13, %s1893_s13 }
  0x1b   : > { %p1896_p5 = pnand %p1894_p11, %p1884_p10 }
  0x1c   : > { %p1903_p8 = por %p1902_p9, %p1901_p12 }
  0x1d   : > { %p1897_p1 = pneg %p1896_p5 }
  0x1f   : > { %p1904_p0 = pnand %p1903_p8, %p1897_p1 }
  0x21   : > { %1907 = shalt.err (!%p1904_p0)
}
  0x22   : > { %s2395_s0 = sld [smem:[#allocation18_spill]]  ;;  %s2417_s11 = smov (%p30_p6, %s29_s11), 0 }
  0x23   : > { %2396 = sst [smem:[#allocation16_spill]] %s2417_s11  ;;  %s2381_s16 = sand.u32 1, %s2066_s20  }
  0x24   : > { %s104_s17 = ssub.s32 %s2074_s22, %s2417_s11  ;;  %s1471_s25 = sshll.u32 %s2381_s16, 8 }
  0x25   : > { %p105_p8 = scmp.eq.s32.totalorder %s104_s17, 0  ;;  %s1585_s27 = sshll.u32 %s2074_s22, 8 }
  0x26   : > { %s232_s7 = scalar_lea.vmem [#allocation7], %s1471_s25  ;;  %s2398_s3 = sld [smem:[#allocation19_spill]] }
  0x27   : > { %s239_s13 = sshll.u32 %s232_s7, 4  ;;  %p1910_p9 = pneg %p2193_p4  ;;  %s240_s13 = int_to_ptr.vmem [resolvable:$true] %s239_s13 }
  0x28   : > { %1693 = dma.hbm_to_vmem [thread:$0]  (!%p2199_p2), %s2395_s0, 1024, %s202_s8, [#allocation3]  }
  0x29   : > { %s2226_s14 = scalar_select %p105_p8, %s2066_s20, %s107_s26  }
  0x2a   : > { %s2231_s8 = scalar_lea.sflag [#allocation3], %s228_s12  ;;  %s1921_s0 = scalar_lea.vmem %s240_s13, 4096 }
  0x2b   : > { %2397 = sst [smem:[#allocation17_spill]] %s2226_s14  ;;  %p1922_p12 = scmp.ne.s32.totalorder %s240_s13, %s1921_s0 }
  0x2c   : > { %s238_s30 = scalar_lea.hbm %s2398_s3, %s1585_s27  ;;  %s2081_s17 = smov [#allocation7]  }
  0x2d   : > { %p1924_p6 = pnand %p1922_p12, %p1910_p9  ;;  %s1926_s25 = sshll.u32 %s2081_s17, 4  ;;  %s1927_s25 = int_to_ptr.vmem [resolvable:$false] %s1926_s25 }
  0x2e   : > { %s1928_s26 = scalar_lea.vmem %s1927_s25, 8192  ;;  %p1929_p5 = scmp.lt.s32.totalorder %s240_s13, %s1927_s25 }
  0x2f   : > { %p1925_p11 = pneg %p1924_p6  ;;  %p1930_p1 = scmp.lt.s32.totalorder %s1928_s26, %s1921_s0 }
  0x31   : > { %p1931_p0 = por %p1930_p1, %p1929_p5 }
  0x33   : > { %p1932_p8 = pnand %p1931_p0, %p1925_p11 }
  0x35   : > { %1935 = shalt.err (!%p1932_p8)
}
  0x36   : > { %s2082_s23 = smov 512   ;;  %s2083_s12 = smov 256  }
  0x37   : > { %s2084_s27 = smov 16   ;;  %s2085_s7 = smov [#allocation5]  }
  0x38   : > { %1700 = dma.hbm_to_vmem [thread:$0]  (!%p2193_p4), %s238_s30, 4096, %s240_s13, %s2231_s8, %s2082_s23, %s2083_s12, %s2084_s27  }
  0x39   : > { %s211_s15 = sshll.u32 %s2085_s7, 4  ;;  %s212_s15 = int_to_ptr.vmem [resolvable:$true] %s211_s15 }
  0x3a   : > { %s1947_s16 = scalar_lea.vmem %s212_s15, 8192  ;;  %p1955_p5 = scmp.lt.s32.totalorder %s212_s15, %s212_s15 }
  0x3b   : > { %p1948_p12 = scmp.ne.s32.totalorder %s212_s15, %s1947_s16  ;;  %p1956_p11 = scmp.lt.s32.totalorder %s1947_s16, %s1947_s16 }
  0x3d   : > { %p1950_p6 = pnand %p1948_p12, %p1884_p10  ;;  %p1957_p1 = por %p1956_p11, %p1955_p5 }
  0x3f   : > { %p1951_p3 = pneg %p1950_p6 }
  0x41   : > { %p1958_p0 = pnand %p1957_p1, %p1951_p3 }
  0x43   : > { %1961 = shalt.err (!%p1958_p0)
}
  0x44   : > { %s2086_s0 = smov 64   ;;  %s2087_s30 = smov 4  }
  0x45   : > { %1696 = dma.hbm_to_vmem [thread:$0]  (!%p2199_p2), %s2372_s1, 8192, %s212_s15, [#allocation6], %s2086_s0, %s2086_s0, %s2087_s30  }
  0x46   : > { %s2399_s25 = sand.u32 1, %s2066_s20   ;;  %s1586_s23 = sshll.u32 %s2074_s22, 6 }
  0x47   : > { %s1474_s26 = sshll.u32 %s2399_s25, 2  ;;  %s259_s16 = scalar_lea.hbm %s2375_s4, %s1586_s23 }
  0x48   : > { %s253_s7 = scalar_lea.vmem [#allocation8], %s1474_s26  ;;  %s2088_s10 = smov [#allocation8]  }
  0x49   : > { %s261_s3 = sshll.u32 %s253_s7, 4  ;;  %s1980_s14 = sshll.u32 %s2088_s10, 4  ;;  %s262_s3 = int_to_ptr.vmem [resolvable:$true] %s261_s3  ;;  %s1981_s14 = int_to_ptr.vmem [resolvable:$false] %s1980_s14 }
  0x4a   : > { %s1975_s11 = scalar_lea.vmem %s262_s3, 64  ;;  %s1982_s15 = scalar_lea.vmem %s1981_s14, 128 }
  0x4b   : > { %p1976_p3 = scmp.ne.s32.totalorder %s262_s3, %s1975_s11  ;;  %p1983_p2 = scmp.lt.s32.totalorder %s262_s3, %s1981_s14 }
  0x4c   : > { %p1984_p12 = scmp.lt.s32.totalorder %s1982_s15, %s1975_s11 }
  0x4d   : > { %p1978_p10 = pnand %p1976_p3, %p1910_p9 }
  0x4e   : > { %p1985_p6 = por %p1984_p12, %p1983_p2 }
  0x4f   : > { %p1979_p8 = pneg %p1978_p10 }
  0x51   : > { %p1986_p5 = pnand %p1985_p6, %p1979_p8 }
  0x53   : > { %1989 = shalt.err (!%p1986_p5)
}
  0x54   : > { %1703 = dma.hbm_to_vmem [thread:$0]  (!%p2193_p4), %s259_s16, 64, %s262_s3, %s2231_s8  }
  0x55   : > { %270 = sbr.rel (%p2184_p13) target bundleno = 581 (0x245), region = 40  ;;  %p2400_p11 = scmp.eq.s32.totalorder (!%p2184_p13), %s2152_s24, 0 }
  0x5a   : > { %2041 = dma.done.wait (%p2400_p11), [#allocation3], 1024   ;;  %p2401_p9 = pmov %p2400_p11 }
  0x5c   : > { %2043 = vsyncadd (%p2401_p9), [#allocation3], 4294966272  ;;  %p2402_p1 = pmov %p2401_p9 }
  0x5e   : > { %2045 = dma.done.wait (%p2402_p1), [#allocation6], 8192   ;;  %p2403_p0 = pmov %p2402_p1 }
  0x5f   : > { %s280_s9 = sand.u32 1, %s2152_s24   ;;  %s2273_s3 = sand.u32 1, %s2062_s19  }
  0x60   : > { %2047 = vsyncadd (%p2403_p0), [#allocation6], 4294959104  ;;  %s1480_s6 = sshll.u32 %s2273_s3, 8  ;;  %s281_s11 = scalar_lea.sflag [#allocation3], %s280_s9 }
  0x61   : > { %s2276_s14 = scalar_lea.vmem [#allocation7], %s1480_s6 }
  0x62   : > { %2049 = dma.done.wait (%p2169_p7), %s281_s11, 4160  }
  0x63   : > { %2051 = vsyncadd (%p2169_p7), %s281_s11, 4294963136  ;;  %v1770_v0 = vld [vmem:[#allocation5 + $0x78] sm:$0xff]   ;;  %v1774_v4 = vld [vmem:[#allocation5 + $0x70] sm:$0xff]   ;;  %s1481_s8 = sshll.u32 %s2273_s3, 2  ;;  %s1482_s0 = sshll.u32 %s2273_s3, 5 }
  0x64   : > { %v1771_v1 = vld [vmem:[#allocation5 + $0xf8] sm:$0xff]   ;;  %1588 = vmatprep.subr.bf16.mxu0 %v1770_v0  ;;  %v1775_v5 = vld [vmem:[#allocation5 + $0xf0] sm:$0xff]   ;;  %v1778_v8 = vld [vmem:[#allocation5 + $0x68] sm:$0xff]   ;;  %s293_s30 = scalar_lea.vmem [#allocation8], %s1481_s8  ;;  %s1587_s13 = sshll.u32 %s2070_s21, 9 }
  0x65   : > { %v1772_v2 = vld [vmem:[#allocation5 + $0x38] sm:$0xff]   ;;  %1610 = vmatprep.subr.bf16.mxu1 %v1771_v1  ;;  %v1776_v6 = vld [vmem:[#allocation5 + $0x30] sm:$0xff]   ;;  %v1779_v9 = vld [vmem:[#allocation5 + $0xe8] sm:$0xff]   ;;  %s324_s17 = scalar_lea.vmem [#allocation9], %s1482_s0  ;;  %s2323_s12 = scalar_lea.hbm %s2376_s5, %s1587_s13 }
  0x66   : > { %v1773_v3 = vld [vmem:[#allocation5 + $0xb8] sm:$0xff]   ;;  %1589 = vmatpush3.bf16.msra.mxu0 %v1772_v2  ;;  %v1777_v7 = vld [vmem:[#allocation5 + $0xb0] sm:$0xff]   ;;  %v1780_v10 = vld [vmem:[#allocation5 + $0x28] sm:$0xff]   ;;  %s1343_s25 = sshll.u32 %s324_s17, 4  ;;  %s1327_s21 = scalar_lea.sflag [#allocation4], %s2273_s3  ;;  %s2325_s25 = int_to_ptr.vmem [resolvable:$true] %s1343_s25 }
  0x67   : > { %1611 = vmatpush3.bf16.msra.mxu1 %v1773_v3  ;;  %1590 = vmatprep.subr.bf16.mxu0 %v1774_v4  ;;  %v1781_v11 = vld [vmem:[#allocation5 + $0xa8] sm:$0xff]   ;;  %v1782_v12 = vld [vmem:[#allocation5 + $0x60] sm:$0xff]   ;;  %v1786_v16 = vld [vmem:[#allocation5 + $0x58] sm:$0xff]   ;;  %s1990_s27 = scalar_lea.vmem %s2325_s25, 512  ;;  %p2404_p13 = scmp.ne.s32.totalorder %s2389_s29, 0 }
  0x68   : > { %1612 = vmatprep.subr.bf16.mxu1 %v1775_v5  ;;  %v1783_v13 = vld [vmem:[#allocation5 + $0xe0] sm:$0xff]   ;;  %v1787_v17 = vld [vmem:[#allocation5 + $0xd8] sm:$0xff]   ;;  %v1790_v20 = vld [vmem:[#allocation5 + $0x50] sm:$0xff]   ;;  %p1991_p7 = scmp.ne.s32.totalorder %s2325_s25, %s1990_s27  ;;  %s2090_s16 = smov [#allocation9]  }
  0x69   : > { %v1784_v14 = vld [vmem:[#allocation5 + $0x20] sm:$0xff]   ;;  %v1788_v18 = vld [vmem:[#allocation5 + $0x18] sm:$0xff]   ;;  %v1791_v21 = vld [vmem:[#allocation5 + $0xd0] sm:$0xff]   ;;  %s1994_s7 = sshll.u32 %s2090_s16, 4  ;;  %s1995_s7 = int_to_ptr.vmem [resolvable:$false] %s1994_s7 }
  0x6a   : > { %1591 = vmatpush3.bf16.msra.mxu0 %v1776_v6  ;;  %v1785_v15 = vld [vmem:[#allocation5 + $0xa0] sm:$0xff]   ;;  %v1789_v19 = vld [vmem:[#allocation5 + $0x98] sm:$0xff]   ;;  %v1792_v22 = vld [vmem:[#allocation5 + $0x10] sm:$0xff]   ;;  %p1992_p4 = pnand %p1991_p7, %p2404_p13  ;;  %s1996_s10 = scalar_lea.vmem %s1995_s7, 1024 }
  0x6b   : > { %1613 = vmatpush3.bf16.msra.mxu1 %v1777_v7  ;;  %1592 = vmatprep.subr.bf16.mxu0 %v1778_v8  ;;  %v1793_v23 = vld [vmem:[#allocation5 + $0x90] sm:$0xff]   ;;  %v1794_v24 = vld [vmem:[#allocation5 + $0x48] sm:$0xff]   ;;  %v1798_v28 = vld [vmem:[#allocation5 + $0x40] sm:$0xff]   ;;  %p1997_p10 = scmp.lt.s32.totalorder %s2325_s25, %s1995_s7  ;;  %p1998_p8 = scmp.lt.s32.totalorder %s1996_s10, %s1990_s27 }
  0x6c   : > { %1614 = vmatprep.subr.bf16.mxu1 %v1779_v9  ;;  %v1795_v25 = vld [vmem:[#allocation5 + $0xc8] sm:$0xff]   ;;  %v1799_v29 = vld [vmem:[#allocation5 + $0xc0] sm:$0xff]   ;;  %v332_v33 = vld [vmem:[#allocation2 + $0x18] sm:$0xff]  ;;  %p1993_p3 = pneg %p1992_p4 }
  0x6d   : > { %v1796_v26 = vld [vmem:[#allocation5 + $0x8] sm:$0xff]   ;;  %v1800_v30 = vld [vmem:[#allocation5] sm:$0xff]   ;;  %v340_v36 = vpack.c.bf16 %v332_v33, %v332_v33  ;;  %v331_v38 = vld [vmem:[#allocation2 + $0x10] sm:$0xff]  ;;  %p1999_p2 = por %p1998_p8, %p1997_p10 }
  0x6e   : > { %1593 = vmatpush3.bf16.msra.mxu0 %v1780_v10  ;;  %v1797_v27 = vld [vmem:[#allocation5 + $0x88] sm:$0xff]   ;;  %v1801_v31 = vld [vmem:[#allocation5 + $0x80] sm:$0xff]   ;;  %v339_v39 = vpack.c.bf16 %v331_v38, %v331_v38  ;;  %v1802_v40 = vld [vmem:[#allocation5 + $0x178] sm:$0xff]  }
  0x6f   : > { %1615 = vmatpush3.bf16.msra.mxu1 %v1781_v11  ;;  %1594 = vmatprep.subr.bf16.mxu0 %v1782_v12  ;;  %v330_v32 = vld [vmem:[#allocation2 + $0x8] sm:$0xff]  ;;  %v329_v34 = vld [vmem:[#allocation2] sm:$0xff]  ;;  %v1803_v41 = vld [vmem:[#allocation5 + $0x1f8] sm:$0xff]   ;;  %p2000_p12 = pnand %p1999_p2, %p1993_p3 }
  0x70   : > { %1616 = vmatprep.subr.bf16.mxu1 %v1783_v13  ;;  %v338_v35 = vpack.c.bf16 %v330_v32, %v330_v32  ;;  %v337_v37 = vpack.c.bf16 %v329_v34, %v329_v34  ;;  %936 = vmatprep.mubr.bf16.mxu1 %v340_v36  ;;  %v1804_v42 = vld [vmem:[#allocation5 + $0x138] sm:$0xff]   ;;  %v1806_v44 = vld [vmem:[#allocation5 + $0x170] sm:$0xff]   ;;  %v1810_v48 = vld [vmem:[#allocation5 + $0x168] sm:$0xff]  }
  0x71   : > { %v1805_v43 = vld [vmem:[#allocation5 + $0x1b8] sm:$0xff]   ;;  %v1807_v45 = vld [vmem:[#allocation5 + $0x1f0] sm:$0xff]   ;;  %v1811_v49 = vld [vmem:[#allocation5 + $0x1e8] sm:$0xff]  }
  0x72   : > { %1595 = vmatpush3.bf16.msra.mxu0 %v1784_v14  ;;  %896 = vmatprep.mubr.bf16.mxu0 %v338_v35  ;;  %v1808_v46 = vld [vmem:[#allocation5 + $0x130] sm:$0xff]   ;;  %v1812_v50 = vld [vmem:[#allocation5 + $0x128] sm:$0xff]   ;;  %v1814_v52 = vld [vmem:[#allocation5 + $0x160] sm:$0xff]  }
  0x73   : > { %1617 = vmatpush3.bf16.msra.mxu1 %v1785_v15  ;;  %1596 = vmatprep.subr.bf16.mxu0 %v1786_v16  ;;  %v1809_v47 = vld [vmem:[#allocation5 + $0x1b0] sm:$0xff]   ;;  %v1813_v51 = vld [vmem:[#allocation5 + $0x1a8] sm:$0xff]   ;;  %v1815_v53 = vld [vmem:[#allocation5 + $0x1e0] sm:$0xff]  }
  0x74   : > { %1618 = vmatprep.subr.bf16.mxu1 %v1787_v17  ;;  %v1816_v54 = vld [vmem:[#allocation5 + $0x120] sm:$0xff]   ;;  %v1818_v56 = vld [vmem:[#allocation5 + $0x158] sm:$0xff]   ;;  %v1822_v60 = vld [vmem:[#allocation5 + $0x150] sm:$0xff]  }
  0x75   : > { %v1817_v55 = vld [vmem:[#allocation5 + $0x1a0] sm:$0xff]   ;;  %v1819_v57 = vld [vmem:[#allocation5 + $0x1d8] sm:$0xff]   ;;  %v1823_v61 = vld [vmem:[#allocation5 + $0x1d0] sm:$0xff]  }
  0x76   : > { %1597 = vmatpush3.bf16.msra.mxu0 %v1788_v18  ;;  %v1820_v58 = vld [vmem:[#allocation5 + $0x118] sm:$0xff]   ;;  %v1824_v62 = vld [vmem:[#allocation5 + $0x110] sm:$0xff]   ;;  %v1826_v0 = vld [vmem:[#allocation5 + $0x148] sm:$0xff]  }
  0x77   : > { %1619 = vmatpush3.bf16.msra.mxu1 %v1789_v19  ;;  %1598 = vmatprep.subr.bf16.mxu0 %v1790_v20  ;;  %v1821_v59 = vld [vmem:[#allocation5 + $0x198] sm:$0xff]   ;;  %v1825_v63 = vld [vmem:[#allocation5 + $0x190] sm:$0xff]   ;;  %v1827_v1 = vld [vmem:[#allocation5 + $0x1c8] sm:$0xff]  }
  0x78   : > { %1620 = vmatprep.subr.bf16.mxu1 %v1791_v21  ;;  %v1828_v2 = vld [vmem:[#allocation5 + $0x108] sm:$0xff]   ;;  %v1830_v4 = vld [vmem:[#allocation5 + $0x140] sm:$0xff]   ;;  %v336_v9 = vld [vmem:[#allocation2 + $0x38] sm:$0xff] }
  0x79   : > { %v1829_v3 = vld [vmem:[#allocation5 + $0x188] sm:$0xff]   ;;  %v1831_v5 = vld [vmem:[#allocation5 + $0x1c0] sm:$0xff]   ;;  %v344_v11 = vpack.c.bf16 %v336_v9, %v336_v9  ;;  %v335_v13 = vld [vmem:[#allocation2 + $0x30] sm:$0xff] }
  0x7a   : > { %1599 = vmatpush3.bf16.msra.mxu0 %v1792_v22  ;;  %v1832_v6 = vld [vmem:[#allocation5 + $0x100] sm:$0xff]   ;;  %v334_v8 = vld [vmem:[#allocation2 + $0x28] sm:$0xff]  ;;  %v343_v15 = vpack.c.bf16 %v335_v13, %v335_v13 }
  0x7b   : > { %1621 = vmatpush3.bf16.msra.mxu1 %v1793_v23  ;;  %1600 = vmatprep.subr.bf16.mxu0 %v1794_v24  ;;  %v1833_v7 = vld [vmem:[#allocation5 + $0x180] sm:$0xff]   ;;  %v342_v10 = vpack.c.bf16 %v334_v8, %v334_v8  ;;  %v1837_v18 = vld [vmem:[%s2276_s14 + $0xe8] ss:$16 sps:$4 sm:$0xff]   ;;  %v1839_v19 = vld [vmem:[%s2276_s14 + $0xec] ss:$16 sps:$4 sm:$0xff]  }
  0x7c   : > { %1622 = vmatprep.subr.bf16.mxu1 %v1795_v25  ;;  %v333_v12 = vld [vmem:[#allocation2 + $0x20] sm:$0xff]  ;;  %v1845_v21 = vld [vmem:[%s2276_s14 + $0xcc] ss:$16 sps:$4 sm:$0xff]   ;;  %v1843_v23 = vld [vmem:[%s2276_s14 + $0xc8] ss:$16 sps:$4 sm:$0xff]  }
  0x7d   : > { %v341_v14 = vpack.c.bf16 %v333_v12, %v333_v12  ;;  %v1834_v16 = vld [vmem:[%s2276_s14 + $0xe0] ss:$16 sps:$4 sm:$0xff]   ;;  %v1836_v17 = vld [vmem:[%s2276_s14 + $0xe4] ss:$16 sps:$4 sm:$0xff]   ;;  %v1851_v25 = vld [vmem:[%s2276_s14 + $0xac] ss:$16 sps:$4 sm:$0xff]   ;;  %v1060_v12 = vlaneseq }
  0x7e   : > { %1601 = vmatpush3.bf16.msra.mxu0 %v1796_v26  ;;  %v1842_v20 = vld [vmem:[%s2276_s14 + $0xc4] ss:$16 sps:$4 sm:$0xff]   ;;  %v1840_v22 = vld [vmem:[%s2276_s14 + $0xc0] ss:$16 sps:$4 sm:$0xff]   ;;  %v1863_v33 = vld [vmem:[%s2276_s14 + $0x6c] ss:$16 sps:$4 sm:$0xff]  }
  0x7f   : > { %1623 = vmatpush3.bf16.msra.mxu1 %v1797_v27  ;;  %1602 = vmatprep.subr.bf16.mxu0 %v1798_v28  ;;  %v1848_v24 = vld [vmem:[%s2276_s14 + $0xa4] ss:$16 sps:$4 sm:$0xff]   ;;  %v1846_v26 = vld [vmem:[%s2276_s14 + $0xa0] ss:$16 sps:$4 sm:$0xff]   ;;  %v1849_v27 = vld [vmem:[%s2276_s14 + $0xa8] ss:$16 sps:$4 sm:$0xff]  }
  0x80   : > { %1624 = vmatprep.subr.bf16.mxu1 %v1799_v29  ;;  %v1854_v28 = vld [vmem:[%s2276_s14 + $0x84] ss:$16 sps:$4 sm:$0xff]   ;;  %v1857_v29 = vld [vmem:[%s2276_s14 + $0x8c] ss:$16 sps:$4 sm:$0xff]   ;;  %v1858_v34 = vld [vmem:[%s2276_s14 + $0x60] ss:$16 sps:$4 sm:$0xff]  }
  0x81   : > { %v1860_v32 = vld [vmem:[%s2276_s14 + $0x64] ss:$16 sps:$4 sm:$0xff]   ;;  %v1861_v35 = vld [vmem:[%s2276_s14 + $0x68] ss:$16 sps:$4 sm:$0xff]   ;;  %v1864_v38 = vld [vmem:[%s2276_s14 + $0x40] ss:$16 sps:$4 sm:$0xff]  }
  0x82   : > { %1603 = vmatpush3.bf16.msra.mxu0 %v1800_v30  ;;  %v1852_v30 = vld [vmem:[%s2276_s14 + $0x80] ss:$16 sps:$4 sm:$0xff]   ;;  %v1866_v36 = vld [vmem:[%s2276_s14 + $0x44] ss:$16 sps:$4 sm:$0xff]   ;;  %v1061_v13 = vshrl.u32 %v1060_v12, 7 }
  0x83   : > { %1625 = vmatpush3.bf16.msra.mxu1 %v1801_v31  ;;  %1632 = vmatprep.subr.bf16.mxu0 %v1802_v40  ;;  %v1855_v31 = vld [vmem:[%s2276_s14 + $0x88] ss:$16 sps:$4 sm:$0xff]   ;;  %v1872_v40 = vld [vmem:[%s2276_s14 + $0x24] ss:$16 sps:$4 sm:$0xff]  }
  0x84   : > { %1654 = vmatprep.subr.bf16.mxu1 %v1803_v41  ;;  %v1875_v41 = vld [vmem:[%s2276_s14 + $0x2c] ss:$16 sps:$4 sm:$0xff]  }
  0x85   : > { %897 = vmatmul.mubr.bf16.vlgmr.msra.gmra.mxu0 %v337_v37  ;;  %v1869_v37 = vld [vmem:[%s2276_s14 + $0x4c] ss:$16 sps:$4 sm:$0xff]  }
  0x86   : > { %937 = vmatmul.mubr.bf16.vlgmr.msra.gmra.mxu1 %v339_v39  ;;  %1633 = vmatpush3.bf16.msra.mxu0 %v1804_v42  ;;  %v1867_v39 = vld [vmem:[%s2276_s14 + $0x48] ss:$16 sps:$4 sm:$0xff]   ;;  %v1870_v42 = vld [vmem:[%s2276_s14 + $0x20] ss:$16 sps:$4 sm:$0xff]  }
  0x87   : > { %1655 = vmatpush3.bf16.msra.mxu1 %v1805_v43  ;;  %1634 = vmatprep.subr.bf16.mxu0 %v1806_v44  ;;  %v1873_v43 = vld [vmem:[%s2276_s14 + $0x28] ss:$16 sps:$4 sm:$0xff]   ;;  %v1878_v44 = vld [vmem:[%s2276_s14 + $0x4] ss:$16 sps:$4 sm:$0xff]  }
  0x88   : > { %1656 = vmatprep.subr.bf16.mxu1 %v1807_v45  ;;  %976 = vmatprep.mubr.bf16.mxu0 %v342_v10  ;;  %v1881_v45 = vld [vmem:[%s2276_s14 + $0xc] ss:$16 sps:$4 sm:$0xff]  }
  0x89   : > { %1016 = vmatprep.mubr.bf16.mxu1 %v344_v11 }
  0x8a   : > { %1635 = vmatpush3.bf16.msra.mxu0 %v1808_v46  ;;  %v1876_v46 = vld [vmem:[%s2276_s14] ss:$16 sps:$4 sm:$0xff]  }
  0x8b   : > { %1657 = vmatpush3.bf16.msra.mxu1 %v1809_v47  ;;  %1636 = vmatprep.subr.bf16.mxu0 %v1810_v48  ;;  %v1879_v47 = vld [vmem:[%s2276_s14 + $0x8] ss:$16 sps:$4 sm:$0xff]   ;;  %v2089_v48 = vmov 0  }
  0x8c   : > { %1658 = vmatprep.subr.bf16.mxu1 %v1811_v49 }
  0x8e   : > { %1637 = vmatpush3.bf16.msra.mxu0 %v1812_v50 }
  0x8f   : > { %1659 = vmatpush3.bf16.msra.mxu1 %v1813_v51  ;;  %1638 = vmatprep.subr.bf16.mxu0 %v1814_v52 }
  0x90   : > { %1660 = vmatprep.subr.bf16.mxu1 %v1815_v53 }
  0x92   : > { %1639 = vmatpush3.bf16.msra.mxu0 %v1816_v54 }
  0x93   : > { %1661 = vmatpush3.bf16.msra.mxu1 %v1817_v55  ;;  %1640 = vmatprep.subr.bf16.mxu0 %v1818_v56 }
  0x94   : > { %1662 = vmatprep.subr.bf16.mxu1 %v1819_v57 }
  0x96   : > { %1641 = vmatpush3.bf16.msra.mxu0 %v1820_v58  ;;  %v1483_v58 = vld [vmem:[%s2373_s2] ss:$0 sm:$0xff] }
  0x97   : > { %1663 = vmatpush3.bf16.msra.mxu1 %v1821_v59  ;;  %1642 = vmatprep.subr.bf16.mxu0 %v1822_v60 }
  0x98   : > { %1664 = vmatprep.subr.bf16.mxu1 %v1823_v61 }
  0x9a   : > { %1643 = vmatpush3.bf16.msra.mxu0 %v1824_v62 }
  0x9b   : > { %1665 = vmatpush3.bf16.msra.mxu1 %v1825_v63  ;;  %1644 = vmatprep.subr.bf16.mxu0 %v1826_v0 }
  0x9c   : > { %1666 = vmatprep.subr.bf16.mxu1 %v1827_v1 }
  0x9e   : > { %1645 = vmatpush3.bf16.msra.mxu0 %v1828_v2 }
  0x9f   : > { %1667 = vmatpush3.bf16.msra.mxu1 %v1829_v3  ;;  %1646 = vmatprep.subr.bf16.mxu0 %v1830_v4 }
  0xa0   : > { %1668 = vmatprep.subr.bf16.mxu1 %v1831_v5 }
  0xa2   : > { %1647 = vmatpush3.bf16.msra.mxu0 %v1832_v6 }
  0xa3   : > { %1669 = vmatpush3.bf16.msra.mxu1 %v1833_v7  ;;  %1240 = vmatprep.subr.bf16.mxu0 %v1836_v17  ;;  %v1066_v17 = vsub.s32 1, %v1061_v13 }
  0xa4   : > { %1281 = vmatprep.subr.bf16.mxu1 %v1839_v19 }
  0xa5   : > { %977 = vmatmul.mubr.bf16.vlgmr.msra.gmra.mxu0 %v341_v14  ;;  %v1062_v14 = vsub.s32 0, %v1061_v13 }
  0xa6   : > { %1017 = vmatmul.mubr.bf16.vlgmr.msra.gmra.mxu1 %v343_v15  ;;  %1241 = vmatpush1.bf16.msra.mxu0 %v1834_v16  ;;  %v1070_v15 = vsub.s32 2, %v1061_v13  ;;  %v1058_v16 = vld [vmem:[%s293_s30] sm:$0xf] }
  0xa7   : > { %1282 = vmatpush1.bf16.msra.mxu1 %v1837_v18  ;;  %1242 = vmatprep.subr.bf16.mxu0 %v1842_v20  ;;  %v1074_v18 = vsub.s32 3, %v1061_v13  ;;  %v1063_v19 = vrot.slane %v1058_v16, %v1062_v14 }
  0xa8   : > { %1283 = vmatprep.subr.bf16.mxu1 %v1845_v21  ;;  %1272 = vmatprep.mubr.bf16.mxu0 %v2089_v48  ;;  %v1071_v20 = vrot.slane %v1058_v16, %v1070_v15  ;;  %v1067_v21 = vrot.slane %v1058_v16, %v1066_v17 }
  0xa9   : > { %1313 = vmatprep.mubr.bf16.mxu1 %v2089_v48 }
  0xaa   : > { %1243 = vmatpush1.bf16.msra.mxu0 %v1840_v22  ;;  %v1075_v22 = vrot.slane %v1058_v16, %v1074_v18 }
  0xab   : > { %1284 = vmatpush1.bf16.msra.mxu1 %v1843_v23  ;;  %1244 = vmatprep.subr.bf16.mxu0 %v1848_v24 }
  0xac   : > { %1285 = vmatprep.subr.bf16.mxu1 %v1851_v25 }
  0xae   : > { %1245 = vmatpush1.bf16.msra.mxu0 %v1846_v26 }
  0xaf   : > { %1286 = vmatpush1.bf16.msra.mxu1 %v1849_v27  ;;  %1246 = vmatprep.subr.bf16.mxu0 %v1854_v28 }
  0xb0   : > { %1287 = vmatprep.subr.bf16.mxu1 %v1857_v29 }
  0xb2   : > { %1247 = vmatpush1.bf16.msra.mxu0 %v1852_v30 }
  0xb3   : > { %1288 = vmatpush1.bf16.msra.mxu1 %v1855_v31  ;;  %1248 = vmatprep.subr.bf16.mxu0 %v1860_v32 }
  0xb4   : > { %1289 = vmatprep.subr.bf16.mxu1 %v1863_v33 }
  0xb6   : > { %1249 = vmatpush1.bf16.msra.mxu0 %v1858_v34 }
  0xb7   : > { %1290 = vmatpush1.bf16.msra.mxu1 %v1861_v35  ;;  %1250 = vmatprep.subr.bf16.mxu0 %v1866_v36 }
  0xb8   : > { %1291 = vmatprep.subr.bf16.mxu1 %v1869_v37 }
  0xba   : > { %1251 = vmatpush1.bf16.msra.mxu0 %v1864_v38 }
  0xbb   : > { %1292 = vmatpush1.bf16.msra.mxu1 %v1867_v39  ;;  %1252 = vmatprep.subr.bf16.mxu0 %v1872_v40 }
  0xbc   : > { %1293 = vmatprep.subr.bf16.mxu1 %v1875_v41 }
  0xbe   : > { %1253 = vmatpush1.bf16.msra.mxu0 %v1870_v42 }
  0xbf   : > { %1294 = vmatpush1.bf16.msra.mxu1 %v1873_v43  ;;  %1254 = vmatprep.subr.bf16.mxu0 %v1878_v44 }
  0xc0   : > { %1295 = vmatprep.subr.bf16.mxu1 %v1881_v45 }
  0xc2   : > { %1255 = vmatpush1.bf16.msra.mxu0 %v1876_v46 }
  0xc3   : > { %1296 = vmatpush1.bf16.msra.mxu1 %v1879_v47 }
 0x145   : > { %v1604_v49 = vpop.f32.mrf.mxu0 }
 0x146   : > { %v1626_v50 = vpop.f32.mrf.mxu1 }
 0x147   : > { %v1605_v51 = vpop.f32.mrf.mxu0 }
 0x148   : > { %v1627_v52 = vpop.f32.mrf.mxu1  ;;  %v1606_v57 = vadd.f32 %v1605_v51, %v1604_v49 }
 0x149   : > { %v1607_v53 = vpop.f32.mrf.mxu0  ;;  %v1628_v60 = vadd.f32 %v1627_v52, %v1626_v50 }
 0x14a   : > { %v1629_v54 = vpop.f32.mrf.mxu1  ;;  %v899_v59 = vadd.f32 %v1606_v57, %v1483_v58 }
 0x14b   : > { %v1608_v55 = vpop.f32.mrf.mxu0 }
 0x14c   : > { %v1630_v56 = vpop.f32.mrf.mxu1  ;;  %v939_v0 = vadd.f32 %v1628_v60, %v899_v59 }
 0x165   : > { %v1648_v61 = vpop.f32.mrf.mxu0 }
 0x166   : > { %v1670_v62 = vpop.f32.mrf.mxu1 }
 0x167   : > { %v1649_v63 = vpop.f32.mrf.mxu0 }
 0x168   : > { %v1650_v1 = vadd.f32 %v1649_v63, %v1648_v61  ;;  %v1671_v2 = vpop.f32.mrf.mxu1 }
 0x169   : > { %v1651_v3 = vpop.f32.mrf.mxu0  ;;  %v1672_v5 = vadd.f32 %v1671_v2, %v1670_v62 }
 0x16a   : > { %v979_v4 = vadd.f32 %v1650_v1, %v939_v0  ;;  %v1673_v6 = vpop.f32.mrf.mxu1 }
 0x16b   : > { %v1652_v7 = vpop.f32.mrf.mxu0 }
 0x16c   : > { %v1019_v8 = vadd.f32 %v1672_v5, %v979_v4  ;;  %v1674_v9 = vpop.f32.mrf.mxu1 }
 0x16e   : > { %v1024_v10 = vmax.f32 %v1019_v8, 0.0 }
 0x170   : > { %v1025_v11 = vpack.c.bf16 %v1024_v10, %v1024_v10 }
 0x172   : > { %1273 = vmatmul.mubr.bf16.vlgmr.msra.gmra.mxu0 %v1025_v11  ;;  %1314 = vmatmul.mubr.bf16.vlgmr.msra.gmra.mxu1 %v1025_v11 }
 0x232   : > { %v1274_v23 = vpop.f32.mrf.mxu0  ;;  %v1315_v24 = vpop.f32.mrf.mxu1 }
 0x233   : > { %v1275_v25 = vadd.f32 %v1274_v23, %v1063_v19  ;;  %v1316_v26 = vadd.f32 %v1315_v24, %v1071_v20 }
 0x234   : > { %v1276_v27 = vpop.f32.mrf.mxu0  ;;  %v1317_v28 = vpop.f32.mrf.mxu1 }
 0x235   : > { %1322 = vst [vmem:[%s324_s17] sm:$0xff] %v1275_v25  ;;  %1324 = vst [vmem:[%s324_s17 + $0x10] sm:$0xff] %v1316_v26  ;;  %v1277_v29 = vadd.f32 %v1276_v27, %v1067_v21  ;;  %v1318_v30 = vadd.f32 %v1317_v28, %v1075_v22 }
 0x236   : > { %v1278_v31 = vpop.f32.mrf.mxu0  ;;  %v1319_v32 = vpop.f32.mrf.mxu1 }
 0x237   : > { %1323 = vst [vmem:[%s324_s17 + $0x8] sm:$0xff] %v1277_v29  ;;  %1325 = vst [vmem:[%s324_s17 + $0x18] sm:$0xff] %v1318_v30 }
 0x238   : > { %v1279_v33 = vpop.f32.mrf.mxu0  ;;  %v1320_v34 = vpop.f32.mrf.mxu1 }
 0x239   : > { %2003 = shalt.err (!%p2000_p12)
}
 0x23a   : > { %s2004_s15 = scalar_lea.hbm %s2323_s12, 512  ;;  %s2008_s6 = scalar_lea.hbm %s2376_s5, 1024 }
 0x23b   : > { %p2005_p6 = scmp.ne.s32.totalorder %s2323_s12, %s2004_s15  ;;  %p2009_p9 = scmp.lt.s32.totalorder %s2323_s12, %s2376_s5 }
 0x23c   : > { %p2010_p1 = scmp.lt.s32.totalorder %s2008_s6, %s2004_s15 }
 0x23d   : > { %p2006_p5 = pnand %p2005_p6, %p2404_p13 }
 0x23e   : > { %p2011_p0 = por %p2010_p1, %p2009_p9 }
 0x23f   : > { %p2007_p11 = pneg %p2006_p5 }
 0x241   : > { %p2012_p7 = pnand %p2011_p0, %p2007_p11 }
 0x243   : > { %2015 = shalt.err (!%p2012_p7)
}
 0x244   : > { %1688 = dma.vmem_to_hbm [thread:$0]  (%p2404_p13), %s2325_s25, 512, %s2323_s12, %s1327_s21  }
 0x245 PF: > { %s2405_s24 = sld [smem:[#allocation15_spill]]  ;;  %s1355_s8 = sand.u32 1, %s2058_s18  }
 0x246   : > { %s2406_s28 = sld [smem:[#allocation14_spill]]  ;;  %s1356_s0 = scalar_lea.sflag [#allocation4], %s1355_s8 }
 0x24b   : > { %p2407_p4 = scmp.ne.s32.totalorder %s2405_s24, 0 }
 0x24c   : > { %p2408_p3 = scmp.ge.s32.totalorder %s2406_s28, 2 }
 0x24e   : > { %p1705_p10 = pnand %p2408_p3, %p2407_p4 }
 0x250   : > { %p1706_p8 = pneg %p1705_p10 }
 0x252   : > { %2053 = dma.done.wait (%p1706_p8), %s1356_s0, 512  }
 0x253   : > { %2055 = vsyncadd (%p1706_p8), %s1356_s0, 4294966784  ;;  %s20_s23 = sadd.s32 1, %s2406_s28   ;;  %s2409_s29 = sld [smem:[#allocation17_spill]] }
 0x254   : > { %p17_p2 = scmp.ge.s32.totalorder %s20_s23, 4   ;;  %s2410_s30 = sld [smem:[#allocation16_spill]] }
 0x255   : > { %s2411_s18 = smov %s2062_s19  ;;  %s2412_s19 = smov %s2066_s20 }
 0x256   : > { %s2414_s21 = smov %s2074_s22  ;;  %19 = sbr.rel (!%p17_p2) target bundleno = 9 (0x9), region = 104 }
 0x259   : > { %s2413_s20 = smov %s2409_s29 }
 0x25a   : > { %s2415_s22 = smov %s2410_s30 }
 0x25b   :  { %1361 = vsyncpa [#allocation3], 1 }
 0x25c   :  { %1363 = vsyncpa [#allocation3 + $0x1], 1 }
 0x25d   :  { %1364 = vsyncpa [#allocation6], 1 }
 0x25e   :  { %1365 = vsyncpa [#allocation4], 1 }
 0x25f   :  { %1367 = vsyncpa [#allocation4 + $0x1], 1 }

</bundles_post_ra>
